<compile_context>
chip_gen: v6e
topology: v6e:2x2x1
jax: 0.10.0
libtpu: 0.0.40
codegen_flags: <defaults>
</compile_context>

<pallas_src>
import jax
import jax.numpy as jnp
from jax.experimental import pallas as pl
from jax.experimental.pallas import tpu as pltpu


ENC_PAD = 128  # lane-dense width for the 3-wide latent code


# ----------------------------- kernel ---------------------------------------


def _autoencoder_kernel(
    x_ref,                                    # (tile, 784) bf16
    w1, b1, w2, b2, w3, b3, w4, b4,           # encoder params (w: bf16, b: f32)
    w5, b5, w6, b6, w7, b7, w8, b8,           # decoder params
    enc_ref, dec_ref,                         # (tile, 128) bf16, (tile, 784) bf16
):
  def linear(h_bf16, w_ref, b_ref):
    # bf16 MXU operands, f32 accumulation, f32 bias add.
    return (
        jnp.dot(h_bf16, w_ref[...], preferred_element_type=jnp.float32)
        + b_ref[...]
    )

  def relu_bf16(z_f32):
    # ReLU in f32, cast once for the next bf16 matmul operand.
    return jnp.maximum(z_f32, 0.0).astype(jnp.bfloat16)

  x = x_ref[...]  # already bf16 (cast in the wrapper; halves input HBM bytes)

  # ---- encoder: 784 -> 128 -> 64 -> 12 -> 3 (ReLU between, none on last) ----
  h = relu_bf16(linear(x, w1, b1))
  h = relu_bf16(linear(h, w2, b2))
  h = relu_bf16(linear(h, w3, b3))
  # w4/b4 are zero-padded to 128 output lanes: lanes >= 3 are exactly zero,
  # so this is a lane-dense store of the true 3-wide encoding.
  e = linear(h, w4, b4)                       # f32 (tile, 128)
  enc_ref[...] = e.astype(enc_ref.dtype)

  # ---- decoder: 3 -> 12 -> 64 -> 128 -> 784 (ReLU between, Sigmoid last) ----
  # w5 has zero rows for the padded lanes, so feeding the padded encoding is
  # mathematically identical to feeding the 3-wide encoding.
  h = relu_bf16(linear(e.astype(jnp.bfloat16), w5, b5))
  h = relu_bf16(linear(h, w6, b6))
  h = relu_bf16(linear(h, w7, b7))
  z = linear(h, w8, b8)
  # Exact sigmoid: the kernel is HBM-bound on every generation, so the exact
  # divide costs nothing in wall-clock and is free accuracy.
  y = 1.0 / (1.0 + jnp.exp(-z))
  dec_ref[...] = y.astype(dec_ref.dtype)


# --------------------------- parameter prep ----------------------------------


def _prepare_params(params):
  """Pads the latent-facing layers to lane width 128 and casts weights to bf16.

  Input: list of (w, b) with w: (in, out) f32, b: (1, out) f32.
  Output: flat list [w1, b1, ..., w8, b8] with w: bf16, b: f32.
  """
  flat = []
  for idx, (w, b) in enumerate(params):
    if idx == 3:
      # Encoder head (12, 3) -> (12, 128), bias (1, 3) -> (1, 128), zero pad.
      w = jnp.pad(w, ((0, 0), (0, ENC_PAD - w.shape[1])))
      b = jnp.pad(b, ((0, 0), (0, ENC_PAD - b.shape[1])))
    elif idx == 4:
      # First decoder layer (3, 12) -> (128, 12) with zero rows for pad lanes.
      w = jnp.pad(w, ((0, ENC_PAD - w.shape[0]), (0, 0)))
    flat.append(w.astype(jnp.bfloat16))
    flat.append(b.astype(jnp.float32))
  return flat


# ------------------------------ helpers ---------------------------------------


def _round_up(a, m):
  return ((a + m - 1) // m) * m


def _vmem_limit_cap():
  """Generation-aware scoped-VMEM cap: 48 MiB on v7x (64 MiB VMEM/TC), 96 MiB
  on v5e/v6e (128 MiB VMEM)."""
  try:
    phys = int(pltpu.get_tpu_info().vmem_capacity_bytes)
  except Exception:
    phys = 64 << 20  # conservative (v7x per-TC VMEM)
  return (48 << 20) if phys <= (64 << 20) else (96 << 20)


# ----------------------------- wrapper ---------------------------------------


def autoencoder_forward(x, params, *, batch_tile=1024):
  """Runs the autoencoder forward pass. Returns (encoded (B,3), decoded (B,784)),
  both f32 (matching the PyTorch module's output contract)."""
  B, F = x.shape
  assert F == 784

  # Clamp the batch tile against the actual batch so that
  #   (a) the grid keeps >= 2 steps (both v7x TensorCores get work under
  #       dimension_semantics=("parallel",)), and
  #   (b) dead padded rows never dominate HBM traffic on small batches.
  # Tiles are multiples of 16 so bf16 blocks stay sublane-tile aligned.
  tile = max(16, min(_round_up(batch_tile, 16), _round_up(pl.cdiv(B, 2), 16)))
  B_pad = _round_up(B, tile)

  # bf16 input halves the ~46%-of-traffic input stream on a mem-bound kernel.
  x_p = x.astype(jnp.bfloat16)
  if B_pad != B:
    x_p = jnp.pad(x_p, ((0, B_pad - B), (0, 0)))

  flat = _prepare_params(params)

  # Every weight/bias is a single full block with a constant index map ->
  # resident in VMEM across all grid steps.
  # NOTE: pipeline_mode=pl.Buffered(1) would drop ~0.5 MB of double-buffering
  # for these constant-index blocks on v7x; omitted for compile safety and
  # accounted for in the explicit VMEM budget below instead.
  def full_spec(arr):
    return pl.BlockSpec(arr.shape, lambda i: (0,) * arr.ndim)

  in_specs = [pl.BlockSpec((tile, 784), lambda i: (i, 0))]
  in_specs += [full_spec(a) for a in flat]

  out_specs = [
      pl.BlockSpec((tile, ENC_PAD), lambda i: (i, 0)),
      pl.BlockSpec((tile, 784), lambda i: (i, 0)),
  ]
  # bf16 outputs: decoded is in [0,1]; the 128-lane enc slab stays lane-dense.
  out_shape = (
      jax.ShapeDtypeStruct((B_pad, ENC_PAD), jnp.bfloat16),
      jax.ShapeDtypeStruct((B_pad, 784), jnp.bfloat16),
  )

  grid_spec = pltpu.PrefetchScalarGridSpec(
      num_scalar_prefetch=0,
      grid=(B_pad // tile,),
      in_specs=in_specs,
      out_specs=out_specs,
  )

  # Explicit VMEM budget: double-buffered bf16 I/O blocks + params (assume
  # double-buffered) + in-kernel activation scratch (f32 z/y on the 784-wide
  # tail plus the small hidden layers) + slack, capped generation-aware.
  io_block_bytes = tile * (784 + 784 + ENC_PAD) * 2            # bf16 blocks
  param_bytes = sum(int(a.size) * a.dtype.itemsize for a in flat)
  act_bytes = tile * 784 * 4 * 3 + tile * (128 + 128 + 64 + 64 + 12) * 4
  vmem_limit = int(min(
      max(2 * (io_block_bytes + param_bytes) + act_bytes + (16 << 20),
          32 << 20),
      _vmem_limit_cap()))

  # Advisory cost estimate for XLA scheduling.
  per_row_macs = 2 * (784 * 128 + 128 * 64 + 64 * 12 + 12 * 3)  # enc + dec
  cost = pl.CostEstimate(
      flops=int(2 * B_pad * per_row_macs),
      transcendentals=int(B_pad * 784),
      bytes_accessed=int(B_pad * (784 + 784 + ENC_PAD) * 2 + param_bytes),
  )

  enc_p, dec_p = pl.pallas_call(
      _autoencoder_kernel,
      out_shape=out_shape,
      grid_spec=grid_spec,
      compiler_params=pltpu.CompilerParams(
          dimension_semantics=("parallel",),
          vmem_limit_bytes=vmem_limit,
      ),
      cost_estimate=cost,
  )(x_p, *flat)

  # Slice padded rows/lanes off IMMEDIATELY (padded rows hold sigmoid of the
  # bias chain, not zeros) and upcast to f32 to match the module semantics.
  enc = enc_p[:B, :3].astype(jnp.float32)
  dec = dec_p[:B].astype(jnp.float32)
  return enc, dec


# ------------------------- parameter initialization --------------------------


def init_params(key):
  """Deterministic init matching nn.Linear's U(-1/sqrt(fan_in), 1/sqrt(fan_in)).

  Returns a list of (w, b) pairs with w of shape (in, out) and b of (1, out).
  """
  layer_dims = [
      (784, 128), (128, 64), (64, 12), (12, 3),     # encoder
      (3, 12), (12, 64), (64, 128), (128, 784),     # decoder
  ]
  params = []
  for (fan_in, fan_out) in layer_dims:
    key, kw, kb = jax.random.split(key, 3)
    bound = 1.0 / jnp.sqrt(jnp.float32(fan_in))
    w = jax.random.uniform(kw, (fan_in, fan_out), jnp.float32, -bound, bound)
    b = jax.random.uniform(kb, (1, fan_out), jnp.float32, -bound, bound)
    params.append((w, b))
  return params


def reference_forward(x, params):
  """Plain-JAX f32 reference of the same forward pass (for a sanity check)."""
  h = x
  for i, (w, b) in enumerate(params[:4]):
    h = h @ w + b
    if i < 3:
      h = jnp.maximum(h, 0.0)
  e = h
  h = e
  for i, (w, b) in enumerate(params[4:]):
    h = h @ w + b
    if i < 3:
      h = jnp.maximum(h, 0.0)
    else:
      h = jax.nn.sigmoid(h)
  return e, h


# ----------------------------------- main -------------------------------------


if __name__ == "__main__":
  key = jax.random.PRNGKey(0)
  key, kx = jax.random.split(key)

  # Small batch: exercises tile clamping (1024 -> 16), batch padding (30 -> 32)
  # and a 2-step grid so both v7x TensorCores get work.
  batch = 30
  x = jax.random.normal(kx, (batch, 784), jnp.float32)
  params = init_params(key)

  enc, dec = autoencoder_forward(x, params)
  enc, dec = jax.block_until_ready((enc, dec))

  enc_ref, dec_ref = reference_forward(x, params)
  assert enc.shape == (batch, 3) and dec.shape == (batch, 784)
  # Accuracy contract: bf16 MXU operands and bf16 I/O (not bit-comparable to
  # the f32 PyTorch module); the sigmoid tail itself is exact.
  assert jnp.allclose(enc, enc_ref, atol=3e-2, rtol=3e-2), (
      float(jnp.max(jnp.abs(enc - enc_ref))))
  assert jnp.allclose(dec, dec_ref, atol=3e-2, rtol=3e-2), (
      float(jnp.max(jnp.abs(dec - dec_ref))))

  print("KERNEL_OK")
</pallas_src>

<mosaic_0001>
module attributes {stable_mosaic.version = 11 : i64} {
  func.func @_autoencoder_kernel(%arg0: i32, %arg1: memref<16x784xbf16, #tpu.memory_space<vmem>>, %arg2: memref<784x128xbf16, #tpu.memory_space<vmem>>, %arg3: memref<1x128xf32, #tpu.memory_space<vmem>>, %arg4: memref<128x64xbf16, #tpu.memory_space<vmem>>, %arg5: memref<1x64xf32, #tpu.memory_space<vmem>>, %arg6: memref<64x12xbf16, #tpu.memory_space<vmem>>, %arg7: memref<1x12xf32, #tpu.memory_space<vmem>>, %arg8: memref<12x128xbf16, #tpu.memory_space<vmem>>, %arg9: memref<1x128xf32, #tpu.memory_space<vmem>>, %arg10: memref<128x12xbf16, #tpu.memory_space<vmem>>, %arg11: memref<1x12xf32, #tpu.memory_space<vmem>>, %arg12: memref<12x64xbf16, #tpu.memory_space<vmem>>, %arg13: memref<1x64xf32, #tpu.memory_space<vmem>>, %arg14: memref<64x128xbf16, #tpu.memory_space<vmem>>, %arg15: memref<1x128xf32, #tpu.memory_space<vmem>>, %arg16: memref<128x784xbf16, #tpu.memory_space<vmem>>, %arg17: memref<1x784xf32, #tpu.memory_space<vmem>>, %arg18: memref<16x128xbf16, #tpu.memory_space<vmem>>, %arg19: memref<16x784xbf16, #tpu.memory_space<vmem>>) attributes {dimension_semantics = [#tpu.dimension_semantics<parallel>], iteration_bounds = array<i64: 2>, scalar_prefetch = 0 : i64, scratch_operands = 0 : i64, tpu.core_type = #tpu.core_type<tc>, window_params = [{transform_indices = @transform_0, window_bounds = array<i64: 16, 784>}, {pipeline_mode = #tpu.pipeline_mode<synchronous>, transform_indices = @transform_1, window_bounds = array<i64: 784, 128>}, {pipeline_mode = #tpu.pipeline_mode<synchronous>, transform_indices = @transform_2, window_bounds = array<i64: 1, 128>}, {pipeline_mode = #tpu.pipeline_mode<synchronous>, transform_indices = @transform_3, window_bounds = array<i64: 128, 64>}, {pipeline_mode = #tpu.pipeline_mode<synchronous>, transform_indices = @transform_4, window_bounds = array<i64: 1, 64>}, {pipeline_mode = #tpu.pipeline_mode<synchronous>, transform_indices = @transform_5, window_bounds = array<i64: 64, 12>}, {pipeline_mode = #tpu.pipeline_mode<synchronous>, transform_indices = @transform_6, window_bounds = array<i64: 1, 12>}, {pipeline_mode = #tpu.pipeline_mode<synchronous>, transform_indices = @transform_7, window_bounds = array<i64: 12, 128>}, {pipeline_mode = #tpu.pipeline_mode<synchronous>, transform_indices = @transform_8, window_bounds = array<i64: 1, 128>}, {pipeline_mode = #tpu.pipeline_mode<synchronous>, transform_indices = @transform_9, window_bounds = array<i64: 128, 12>}, {pipeline_mode = #tpu.pipeline_mode<synchronous>, transform_indices = @transform_10, window_bounds = array<i64: 1, 12>}, {pipeline_mode = #tpu.pipeline_mode<synchronous>, transform_indices = @transform_11, window_bounds = array<i64: 12, 64>}, {pipeline_mode = #tpu.pipeline_mode<synchronous>, transform_indices = @transform_12, window_bounds = array<i64: 1, 64>}, {pipeline_mode = #tpu.pipeline_mode<synchronous>, transform_indices = @transform_13, window_bounds = array<i64: 64, 128>}, {pipeline_mode = #tpu.pipeline_mode<synchronous>, transform_indices = @transform_14, window_bounds = array<i64: 1, 128>}, {pipeline_mode = #tpu.pipeline_mode<synchronous>, transform_indices = @transform_15, window_bounds = array<i64: 128, 784>}, {pipeline_mode = #tpu.pipeline_mode<synchronous>, transform_indices = @transform_16, window_bounds = array<i64: 1, 784>}, {transform_indices = @transform_17, window_bounds = array<i64: 16, 128>}, {transform_indices = @transform_18, window_bounds = array<i64: 16, 784>}]} {
    %c0 = arith.constant 0 : index
    %c0_0 = arith.constant 0 : index
    %0 = vector.load %arg1[%c0, %c0_0] : memref<16x784xbf16, #tpu.memory_space<vmem>>, vector<16x784xbf16>
    %c0_1 = arith.constant 0 : index
    %c0_2 = arith.constant 0 : index
    %1 = vector.load %arg2[%c0_1, %c0_2] : memref<784x128xbf16, #tpu.memory_space<vmem>>, vector<784x128xbf16>
    %cst = arith.constant dense<0.000000e+00> : vector<16x128xf32>
    %2 = tpu.matmul %0, %1, %cst {dimension_numbers = #tpu.dot_dimension_numbers<[1], [0], [0], [1], [0, 0, 1, 1], [], []>} : vector<16x784xbf16>, vector<784x128xbf16>, vector<16x128xf32> -> vector<16x128xf32>
    %c0_3 = arith.constant 0 : index
    %c0_4 = arith.constant 0 : index
    %3 = vector.load %arg3[%c0_3, %c0_4] : memref<1x128xf32, #tpu.memory_space<vmem>>, vector<1x128xf32>
    %4 = vector.broadcast %3 : vector<1x128xf32> to vector<16x128xf32>
    %5 = arith.addf %2, %4 : vector<16x128xf32>
    %cst_5 = arith.constant 0.000000e+00 : f32
    %6 = vector.broadcast %cst_5 : f32 to vector<16x128xf32>
    %7 = arith.maximumf %5, %6 : vector<16x128xf32>
    %8 = arith.truncf %7 : vector<16x128xf32> to vector<16x128xbf16>
    %c0_6 = arith.constant 0 : index
    %c0_7 = arith.constant 0 : index
    %9 = vector.load %arg4[%c0_6, %c0_7] : memref<128x64xbf16, #tpu.memory_space<vmem>>, vector<128x64xbf16>
    %cst_8 = arith.constant dense<0.000000e+00> : vector<16x64xf32>
    %10 = tpu.matmul %8, %9, %cst_8 {dimension_numbers = #tpu.dot_dimension_numbers<[1], [0], [0], [1], [0, 0, 1, 1], [], []>} : vector<16x128xbf16>, vector<128x64xbf16>, vector<16x64xf32> -> vector<16x64xf32>
    %c0_9 = arith.constant 0 : index
    %c0_10 = arith.constant 0 : index
    %11 = vector.load %arg5[%c0_9, %c0_10] : memref<1x64xf32, #tpu.memory_space<vmem>>, vector<1x64xf32>
    %12 = vector.broadcast %11 : vector<1x64xf32> to vector<16x64xf32>
    %13 = arith.addf %10, %12 : vector<16x64xf32>
    %cst_11 = arith.constant 0.000000e+00 : f32
    %14 = vector.broadcast %cst_11 : f32 to vector<16x64xf32>
    %15 = arith.maximumf %13, %14 : vector<16x64xf32>
    %16 = arith.truncf %15 : vector<16x64xf32> to vector<16x64xbf16>
    %c0_12 = arith.constant 0 : index
    %c0_13 = arith.constant 0 : index
    %17 = vector.load %arg6[%c0_12, %c0_13] : memref<64x12xbf16, #tpu.memory_space<vmem>>, vector<64x12xbf16>
    %cst_14 = arith.constant dense<0.000000e+00> : vector<16x12xf32>
    %18 = tpu.matmul %16, %17, %cst_14 {dimension_numbers = #tpu.dot_dimension_numbers<[1], [0], [0], [1], [0, 0, 1, 1], [], []>} : vector<16x64xbf16>, vector<64x12xbf16>, vector<16x12xf32> -> vector<16x12xf32>
    %c0_15 = arith.constant 0 : index
    %c0_16 = arith.constant 0 : index
    %19 = vector.load %arg7[%c0_15, %c0_16] : memref<1x12xf32, #tpu.memory_space<vmem>>, vector<1x12xf32>
    %20 = vector.broadcast %19 : vector<1x12xf32> to vector<16x12xf32>
    %21 = arith.addf %18, %20 : vector<16x12xf32>
    %cst_17 = arith.constant 0.000000e+00 : f32
    %22 = vector.broadcast %cst_17 : f32 to vector<16x12xf32>
    %23 = arith.maximumf %21, %22 : vector<16x12xf32>
    %24 = arith.truncf %23 : vector<16x12xf32> to vector<16x12xbf16>
    %c0_18 = arith.constant 0 : index
    %c0_19 = arith.constant 0 : index
    %25 = vector.load %arg8[%c0_18, %c0_19] : memref<12x128xbf16, #tpu.memory_space<vmem>>, vector<12x128xbf16>
    %cst_20 = arith.constant dense<0.000000e+00> : vector<16x128xf32>
    %26 = tpu.matmul %24, %25, %cst_20 {dimension_numbers = #tpu.dot_dimension_numbers<[1], [0], [0], [1], [0, 0, 1, 1], [], []>} : vector<16x12xbf16>, vector<12x128xbf16>, vector<16x128xf32> -> vector<16x128xf32>
    %c0_21 = arith.constant 0 : index
    %c0_22 = arith.constant 0 : index
    %27 = vector.load %arg9[%c0_21, %c0_22] : memref<1x128xf32, #tpu.memory_space<vmem>>, vector<1x128xf32>
    %28 = vector.broadcast %27 : vector<1x128xf32> to vector<16x128xf32>
    %29 = arith.addf %26, %28 : vector<16x128xf32>
    %30 = arith.truncf %29 : vector<16x128xf32> to vector<16x128xbf16>
    %c0_23 = arith.constant 0 : index
    %c0_24 = arith.constant 0 : index
    %31 = vector.load %arg18[%c0_23, %c0_24] : memref<16x128xbf16, #tpu.memory_space<vmem>>, vector<16x128xbf16>
    tpu.vector_store %arg18[%c0_23, %c0_24], %30 {strides = array<i32>} : memref<16x128xbf16, #tpu.memory_space<vmem>>, vector<16x128xbf16>,
    %32 = arith.truncf %29 : vector<16x128xf32> to vector<16x128xbf16>
    %c0_25 = arith.constant 0 : index
    %c0_26 = arith.constant 0 : index
    %33 = vector.load %arg10[%c0_25, %c0_26] : memref<128x12xbf16, #tpu.memory_space<vmem>>, vector<128x12xbf16>
    %cst_27 = arith.constant dense<0.000000e+00> : vector<16x12xf32>
    %34 = tpu.matmul %32, %33, %cst_27 {dimension_numbers = #tpu.dot_dimension_numbers<[1], [0], [0], [1], [0, 0, 1, 1], [], []>} : vector<16x128xbf16>, vector<128x12xbf16>, vector<16x12xf32> -> vector<16x12xf32>
    %c0_28 = arith.constant 0 : index
    %c0_29 = arith.constant 0 : index
    %35 = vector.load %arg11[%c0_28, %c0_29] : memref<1x12xf32, #tpu.memory_space<vmem>>, vector<1x12xf32>
    %36 = vector.broadcast %35 : vector<1x12xf32> to vector<16x12xf32>
    %37 = arith.addf %34, %36 : vector<16x12xf32>
    %cst_30 = arith.constant 0.000000e+00 : f32
    %38 = vector.broadcast %cst_30 : f32 to vector<16x12xf32>
    %39 = arith.maximumf %37, %38 : vector<16x12xf32>
    %40 = arith.truncf %39 : vector<16x12xf32> to vector<16x12xbf16>
    %c0_31 = arith.constant 0 : index
    %c0_32 = arith.constant 0 : index
    %41 = vector.load %arg12[%c0_31, %c0_32] : memref<12x64xbf16, #tpu.memory_space<vmem>>, vector<12x64xbf16>
    %cst_33 = arith.constant dense<0.000000e+00> : vector<16x64xf32>
    %42 = tpu.matmul %40, %41, %cst_33 {dimension_numbers = #tpu.dot_dimension_numbers<[1], [0], [0], [1], [0, 0, 1, 1], [], []>} : vector<16x12xbf16>, vector<12x64xbf16>, vector<16x64xf32> -> vector<16x64xf32>
    %c0_34 = arith.constant 0 : index
    %c0_35 = arith.constant 0 : index
    %43 = vector.load %arg13[%c0_34, %c0_35] : memref<1x64xf32, #tpu.memory_space<vmem>>, vector<1x64xf32>
    %44 = vector.broadcast %43 : vector<1x64xf32> to vector<16x64xf32>
    %45 = arith.addf %42, %44 : vector<16x64xf32>
    %cst_36 = arith.constant 0.000000e+00 : f32
    %46 = vector.broadcast %cst_36 : f32 to vector<16x64xf32>
    %47 = arith.maximumf %45, %46 : vector<16x64xf32>
    %48 = arith.truncf %47 : vector<16x64xf32> to vector<16x64xbf16>
    %c0_37 = arith.constant 0 : index
    %c0_38 = arith.constant 0 : index
    %49 = vector.load %arg14[%c0_37, %c0_38] : memref<64x128xbf16, #tpu.memory_space<vmem>>, vector<64x128xbf16>
    %cst_39 = arith.constant dense<0.000000e+00> : vector<16x128xf32>
    %50 = tpu.matmul %48, %49, %cst_39 {dimension_numbers = #tpu.dot_dimension_numbers<[1], [0], [0], [1], [0, 0, 1, 1], [], []>} : vector<16x64xbf16>, vector<64x128xbf16>, vector<16x128xf32> -> vector<16x128xf32>
    %c0_40 = arith.constant 0 : index
    %c0_41 = arith.constant 0 : index
    %51 = vector.load %arg15[%c0_40, %c0_41] : memref<1x128xf32, #tpu.memory_space<vmem>>, vector<1x128xf32>
    %52 = vector.broadcast %51 : vector<1x128xf32> to vector<16x128xf32>
    %53 = arith.addf %50, %52 : vector<16x128xf32>
    %cst_42 = arith.constant 0.000000e+00 : f32
    %54 = vector.broadcast %cst_42 : f32 to vector<16x128xf32>
    %55 = arith.maximumf %53, %54 : vector<16x128xf32>
    %56 = arith.truncf %55 : vector<16x128xf32> to vector<16x128xbf16>
    %c0_43 = arith.constant 0 : index
    %c0_44 = arith.constant 0 : index
    %57 = vector.load %arg16[%c0_43, %c0_44] : memref<128x784xbf16, #tpu.memory_space<vmem>>, vector<128x784xbf16>
    %cst_45 = arith.constant dense<0.000000e+00> : vector<16x784xf32>
    %58 = tpu.matmul %56, %57, %cst_45 {dimension_numbers = #tpu.dot_dimension_numbers<[1], [0], [0], [1], [0, 0, 1, 1], [], []>} : vector<16x128xbf16>, vector<128x784xbf16>, vector<16x784xf32> -> vector<16x784xf32>
    %c0_46 = arith.constant 0 : index
    %c0_47 = arith.constant 0 : index
    %59 = vector.load %arg17[%c0_46, %c0_47] : memref<1x784xf32, #tpu.memory_space<vmem>>, vector<1x784xf32>
    %60 = vector.broadcast %59 : vector<1x784xf32> to vector<16x784xf32>
    %61 = arith.addf %58, %60 : vector<16x784xf32>
    %cst_48 = arith.constant 0.000000e+00 : f32
    %62 = vector.broadcast %cst_48 : f32 to vector<16x784xf32>
    %63 = arith.subf %62, %61 : vector<16x784xf32>
    %64 = math.exp %63 : vector<16x784xf32>
    %cst_49 = arith.constant 1.000000e+00 : f32
    %65 = vector.broadcast %cst_49 : f32 to vector<16x784xf32>
    %66 = arith.addf %65, %64 : vector<16x784xf32>
    %cst_50 = arith.constant 1.000000e+00 : f32
    %67 = vector.broadcast %cst_50 : f32 to vector<16x784xf32>
    %68 = arith.divf %67, %66 : vector<16x784xf32>
    %69 = arith.truncf %68 : vector<16x784xf32> to vector<16x784xbf16>
    %c0_51 = arith.constant 0 : index
    %c0_52 = arith.constant 0 : index
    %70 = vector.load %arg19[%c0_51, %c0_52] : memref<16x784xbf16, #tpu.memory_space<vmem>>, vector<16x784xbf16>
    tpu.vector_store %arg19[%c0_51, %c0_52], %69 {strides = array<i32>} : memref<16x784xbf16, #tpu.memory_space<vmem>>, vector<16x784xbf16>,
    return
  }
  func.func @transform_0(%arg0: i32) -> (i32, i32) {
    %c0_i32 = arith.constant 0 : i32
    %c0_i32_0 = arith.constant 0 : i32
    return %arg0, %c0_i32 : i32, i32
  }
  func.func @transform_1(%arg0: i32) -> (i32, i32) {
    %c0_i32 = arith.constant 0 : i32
    %c0_i32_0 = arith.constant 0 : i32
    %c0_i32_1 = arith.constant 0 : i32
    return %c0_i32, %c0_i32_0 : i32, i32
  }
  func.func @transform_2(%arg0: i32) -> (i32, i32) {
    %c0_i32 = arith.constant 0 : i32
    %c0_i32_0 = arith.constant 0 : i32
    %c0_i32_1 = arith.constant 0 : i32
    return %c0_i32, %c0_i32_0 : i32, i32
  }
  func.func @transform_3(%arg0: i32) -> (i32, i32) {
    %c0_i32 = arith.constant 0 : i32
    %c0_i32_0 = arith.constant 0 : i32
    %c0_i32_1 = arith.constant 0 : i32
    return %c0_i32, %c0_i32_0 : i32, i32
  }
  func.func @transform_4(%arg0: i32) -> (i32, i32) {
    %c0_i32 = arith.constant 0 : i32
    %c0_i32_0 = arith.constant 0 : i32
    %c0_i32_1 = arith.constant 0 : i32
    return %c0_i32, %c0_i32_0 : i32, i32
  }
  func.func @transform_5(%arg0: i32) -> (i32, i32) {
    %c0_i32 = arith.constant 0 : i32
    %c0_i32_0 = arith.constant 0 : i32
    %c0_i32_1 = arith.constant 0 : i32
    return %c0_i32, %c0_i32_0 : i32, i32
  }
  func.func @transform_6(%arg0: i32) -> (i32, i32) {
    %c0_i32 = arith.constant 0 : i32
    %c0_i32_0 = arith.constant 0 : i32
    %c0_i32_1 = arith.constant 0 : i32
    return %c0_i32, %c0_i32_0 : i32, i32
  }
  func.func @transform_7(%arg0: i32) -> (i32, i32) {
    %c0_i32 = arith.constant 0 : i32
    %c0_i32_0 = arith.constant 0 : i32
    %c0_i32_1 = arith.constant 0 : i32
    return %c0_i32, %c0_i32_0 : i32, i32
  }
  func.func @transform_8(%arg0: i32) -> (i32, i32) {
    %c0_i32 = arith.constant 0 : i32
    %c0_i32_0 = arith.constant 0 : i32
    %c0_i32_1 = arith.constant 0 : i32
    return %c0_i32, %c0_i32_0 : i32, i32
  }
  func.func @transform_9(%arg0: i32) -> (i32, i32) {
    %c0_i32 = arith.constant 0 : i32
    %c0_i32_0 = arith.constant 0 : i32
    %c0_i32_1 = arith.constant 0 : i32
    return %c0_i32, %c0_i32_0 : i32, i32
  }
  func.func @transform_10(%arg0: i32) -> (i32, i32) {
    %c0_i32 = arith.constant 0 : i32
    %c0_i32_0 = arith.constant 0 : i32
    %c0_i32_1 = arith.constant 0 : i32
    return %c0_i32, %c0_i32_0 : i32, i32
  }
  func.func @transform_11(%arg0: i32) -> (i32, i32) {
    %c0_i32 = arith.constant 0 : i32
    %c0_i32_0 = arith.constant 0 : i32
    %c0_i32_1 = arith.constant 0 : i32
    return %c0_i32, %c0_i32_0 : i32, i32
  }
  func.func @transform_12(%arg0: i32) -> (i32, i32) {
    %c0_i32 = arith.constant 0 : i32
    %c0_i32_0 = arith.constant 0 : i32
    %c0_i32_1 = arith.constant 0 : i32
    return %c0_i32, %c0_i32_0 : i32, i32
  }
  func.func @transform_13(%arg0: i32) -> (i32, i32) {
    %c0_i32 = arith.constant 0 : i32
    %c0_i32_0 = arith.constant 0 : i32
    %c0_i32_1 = arith.constant 0 : i32
    return %c0_i32, %c0_i32_0 : i32, i32
  }
  func.func @transform_14(%arg0: i32) -> (i32, i32) {
    %c0_i32 = arith.constant 0 : i32
    %c0_i32_0 = arith.constant 0 : i32
    %c0_i32_1 = arith.constant 0 : i32
    return %c0_i32, %c0_i32_0 : i32, i32
  }
  func.func @transform_15(%arg0: i32) -> (i32, i32) {
    %c0_i32 = arith.constant 0 : i32
    %c0_i32_0 = arith.constant 0 : i32
    %c0_i32_1 = arith.constant 0 : i32
    return %c0_i32, %c0_i32_0 : i32, i32
  }
  func.func @transform_16(%arg0: i32) -> (i32, i32) {
    %c0_i32 = arith.constant 0 : i32
    %c0_i32_0 = arith.constant 0 : i32
    %c0_i32_1 = arith.constant 0 : i32
    return %c0_i32, %c0_i32_0 : i32, i32
  }
  func.func @transform_17(%arg0: i32) -> (i32, i32) {
    %c0_i32 = arith.constant 0 : i32
    %c0_i32_0 = arith.constant 0 : i32
    return %arg0, %c0_i32 : i32, i32
  }
  func.func @transform_18(%arg0: i32) -> (i32, i32) {
    %c0_i32 = arith.constant 0 : i32
    %c0_i32_0 = arith.constant 0 : i32
    return %arg0, %c0_i32 : i32, i32
  }
}

</mosaic_0001>

<bundles_post_ra>
// kernel: tpu_custom_call.1
= control target key start
LH: loop header
LB: loop body
LE: loop exit
PB: predicated region body
PF: predicated region fallthrough
CT: control target
= control target key end

     0   :  { %s4097_s0 = inlined_call_operand.vmem [shape: bf16[32,784], index: 0, kind: input, shape index: {}]   ;;  %s4098_s1 = inlined_call_operand.vmem [shape: bf16[784,128], index: 1, kind: input, shape index: {}]   ;;  %s4099_s2 = inlined_call_operand.vmem [shape: f32[1,128], index: 2, kind: input, shape index: {}]   ;;  %s4100_s3 = inlined_call_operand.vmem [shape: bf16[128,64], index: 3, kind: input, shape index: {}]   ;;  %s4101_s4 = inlined_call_operand.vmem [shape: f32[1,64], index: 4, kind: input, shape index: {}]   ;;  %s4102_s5 = inlined_call_operand.vmem [shape: bf16[64,12], index: 5, kind: input, shape index: {}]   ;;  %s4103_s6 = inlined_call_operand.vmem [shape: f32[1,12], index: 6, kind: input, shape index: {}]   ;;  %s4104_s7 = inlined_call_operand.vmem [shape: bf16[12,128], index: 7, kind: input, shape index: {}]   ;;  %s4105_s8 = inlined_call_operand.vmem [shape: f32[1,128], index: 8, kind: input, shape index: {}]   ;;  %s4106_s9 = inlined_call_operand.vmem [shape: bf16[128,12], index: 9, kind: input, shape index: {}]   ;;  %s4107_s10 = inlined_call_operand.vmem [shape: f32[1,12], index: 10, kind: input, shape index: {}]   ;;  %s4108_s11 = inlined_call_operand.vmem [shape: bf16[12,64], index: 11, kind: input, shape index: {}]   ;;  %s4109_s12 = inlined_call_operand.vmem [shape: f32[1,64], index: 12, kind: input, shape index: {}]   ;;  %s4110_s13 = inlined_call_operand.vmem [shape: bf16[64,128], index: 13, kind: input, shape index: {}]   ;;  %s4111_s14 = inlined_call_operand.vmem [shape: f32[1,128], index: 14, kind: input, shape index: {}]   ;;  %s4112_s15 = inlined_call_operand.vmem [shape: bf16[128,784], index: 15, kind: input, shape index: {}]   ;;  %s4113_s16 = inlined_call_operand.vmem [shape: f32[1,784], index: 16, kind: input, shape index: {}]   ;;  %s4114_s17 = inlined_call_operand.hbm [shape: bf16[32,128], index: 17, kind: output, shape index: {0}]   ;;  %s4115_s18 = inlined_call_operand.hbm [shape: bf16[32,784], index: 18, kind: output, shape index: {1}]  }
   0x1   :  { %4124 = sst [smem:[#allocation14_spill]] %s4097_s0 }
   0x2   :  { %4125 = sst [smem:[#allocation15_spill]] %s4098_s1 }
   0x3   :  { %4126 = sst [smem:[#allocation16_spill]] %s4099_s2 }
   0x4   :  { %4127 = sst [smem:[#allocation17_spill]] %s4100_s3 }
   0x5   :  { %4128 = sst [smem:[#allocation18_spill]] %s4115_s18 }
   0x6   :  { %24 = vsyncpa [#allocation3], 0 }
   0x7   :  { %26 = vsyncpa [#allocation3 + $0x1], 0 }
   0x8   :  { %27 = vsyncpa [#allocation5], 0 }
   0x9   :  { %29 = vsyncpa [#allocation5 + $0x1], 0  ;;  %s3445_s27 = smov 0   ;;  %s3447_s28 = smov 0  }
   0xa   :  { %s3449_s29 = smov 0   ;;  %s3451_s30 = smov 0  }
   0xb LB: > { %4129 = sst [smem:[#allocation8_spill]] %s3327_s27  ;;  %s3466_s0 = sadd.s32 4294967295, %s3339_s30   ;;  %s3339_s30 = sphi %s3451_s30, %s4147_s30   ;;  %s3335_s29 = sphi %s3449_s29, %s4149_s29   ;;  %s3331_s28 = sphi %s3447_s28, %s4151_s28   ;;  %s3327_s27 = sphi %s3445_s27, %s4150_s27  }
   0xc   : > { %4130 = sst [smem:[#allocation9_spill]] %s3335_s29  ;;  %s2572_s19 = sadd.s32 4294967294, %s3339_s30  }
   0xd   : > { %4131 = sst [smem:[#allocation10_spill]] %s3339_s30  ;;  %s3470_s1 = sadd.s32 1, %s3339_s30  }
   0xe   : > { %4132 = sst [smem:[#allocation11_spill]] %s3470_s1  ;;  %s404_s20 = sadd.s32 1, %s3335_s29 }
   0xf   : > { %s401_s21 = ssub.s32 %s3339_s30, %s3470_s1  ;;  %p414_p0 = scmp.ne.s32.totalorder %s3335_s29, %s3331_s28 }
  0x10   : > { %p402_p1 = scmp.eq.s32.totalorder %s401_s21, 0  ;;  %p415_p2 = scmp.eq.s32.totalorder %s3466_s0, 1 }
  0x11   : > { %p420_p3 = scmp.ne.s32.totalorder %s3331_s28, %s3327_s27  ;;  %p421_p4 = scmp.eq.s32.totalorder %s2572_s19, 1 }
  0x12   : > { %s3481_s22 = scalar_select %p402_p1, %s3335_s29, %s404_s20  }
  0x13   : > { %p3483_p5 = por %p415_p2, %p414_p0  ;;  %p3487_p6 = por %p421_p4, %p420_p3 }
  0x14   : > { %4133 = sst [smem:[#allocation12_spill]] %s3481_s22  ;;  %p2575_p7 = scmp.ge.s32.totalorder %s3339_s30, 1 }
  0x15   : > { %s4135_s23 = scalar_select %p3487_p6, 1, 0 }
  0x16   : > { %p523_p8 = scmp.lt.s32.totalorder %s3339_s30, 3 }
  0x17   : > { %4136 = sst [smem:[#allocation13_spill]] %s4135_s23 }
  0x18   : > { %p524_p9 = pnand %p2575_p7, %p523_p8 }
  0x19   : > { %s4137_s26 = sld [smem:[#allocation15_spill]] (!%p524_p9)  ;;  %s2577_s23 = sshll.u32 (!%p524_p9), %s3466_s0, 1 }
  0x1a   : > { %527 = sbr.rel (%p524_p9) target bundleno = 1806 (0x70e), region = 88  ;;  %p584_p10 = scmp.lt.s32.totalorder (!%p524_p9), %s2577_s23, 3 }
  0x1b   : > { %s4138_s18 = sld [smem:[#allocation14_spill]] (!%p524_p9)  ;;  %s3764_s25 = sand.u32 (!%p524_p9), 1, %s3331_s28  }
  0x1c   : > { %s4139_s3 = sld [smem:[#allocation17_spill]] (!%p524_p9)  ;;  %s3344_s20 = smov (!%p524_p9), [#allocation2]  }
  0x1d   : > { %s4140_s27 = sld [smem:[#allocation16_spill]] (!%p524_p9)  ;;  %s3253_s24 = sshll.u32 (!%p524_p9), %s3344_s20, 4  ;;  %s3254_s24 = int_to_ptr.vmem [resolvable:$false] %s3253_s24 }
  0x1f   : > { %v3028_v0 = vld [vmem:[%s4137_s26 + $0x78] sm:$0xff]   ;;  %v3032_v4 = vld [vmem:[%s4137_s26 + $0x70] sm:$0xff]   ;;  %v3036_v8 = vld [vmem:[%s4137_s26 + $0x68] sm:$0xff]   ;;  %s4153_s23 = smov (!%p584_p10, %s2577_s23), 3  ;;  %v3341_v38 = vmov 0.0   ;;  %vm3342_vm0 = vmmov 0  }
  0x20   : > { %v3029_v1 = vld [vmem:[%s4137_s26 + $0x38] sm:$0xff]   ;;  %2763 = vmatprep.subr.bf16.mxu0 %v3028_v0  ;;  %v3033_v5 = vld [vmem:[%s4137_s26 + $0x30] sm:$0xff]   ;;  %v3037_v9 = vld [vmem:[%s4137_s26 + $0x28] sm:$0xff]   ;;  %s2975_s19 = smul.u32 28, %s4153_s23  ;;  %vm1035_vm1 = vcmask 130048   ;;  %vm1360_vm2 = vcmask 523264  }
  0x21   : > { %v3030_v2 = vld [vmem:[%s4137_s26 + $0xf8] sm:$0xff]   ;;  %2764 = vmatpush3.bf16.msra.mxu0 %v3029_v1  ;;  %v3034_v6 = vld [vmem:[%s4137_s26 + $0xf0] sm:$0xff]   ;;  %v3038_v10 = vld [vmem:[%s4137_s26 + $0xe8] sm:$0xff]   ;;  %vm1426_vm3 = vcmask 1045504   ;;  %vm1422_vm4 = vcmask 97280  }
  0x22   : > { %v3031_v3 = vld [vmem:[%s4137_s26 + $0xb8] sm:$0xff]   ;;  %2785 = vmatprep.subr.bf16.mxu1 %v3030_v2  ;;  %2765 = vmatprep.subr.bf16.mxu0 %v3032_v4  ;;  %v3035_v7 = vld [vmem:[%s4137_s26 + $0xb0] sm:$0xff]   ;;  %v3039_v11 = vld [vmem:[%s4137_s26 + $0xa8] sm:$0xff]   ;;  %s3584_s30 = scalar_lea.vmem %s4138_s18, %s2975_s19 }
  0x23   : > { %2786 = vmatpush3.bf16.msra.mxu1 %v3031_v3  ;;  %v3040_v12 = vld [vmem:[%s4137_s26 + $0x60] sm:$0xff]   ;;  %v3044_v16 = vld [vmem:[%s4137_s26 + $0x58] sm:$0xff]   ;;  %v3048_v20 = vld [vmem:[%s4137_s26 + $0x50] sm:$0xff]  }
  0x24   : > { %2787 = vmatprep.subr.bf16.mxu1 %v3034_v6  ;;  %v3041_v13 = vld [vmem:[%s4137_s26 + $0x20] sm:$0xff]   ;;  %v3045_v17 = vld [vmem:[%s4137_s26 + $0x18] sm:$0xff]   ;;  %v3049_v21 = vld [vmem:[%s4137_s26 + $0x10] sm:$0xff]  }
  0x25   : > { %2766 = vmatpush3.bf16.msra.mxu0 %v3033_v5  ;;  %v3042_v14 = vld [vmem:[%s4137_s26 + $0xe0] sm:$0xff]   ;;  %v3046_v18 = vld [vmem:[%s4137_s26 + $0xd8] sm:$0xff]   ;;  %v3050_v22 = vld [vmem:[%s4137_s26 + $0xd0] sm:$0xff]  }
  0x26   : > { %2767 = vmatprep.subr.bf16.mxu0 %v3036_v8  ;;  %v3043_v15 = vld [vmem:[%s4137_s26 + $0xa0] sm:$0xff]   ;;  %v3047_v19 = vld [vmem:[%s4137_s26 + $0x98] sm:$0xff]   ;;  %v3051_v23 = vld [vmem:[%s4137_s26 + $0x90] sm:$0xff]  }
  0x27   : > { %2788 = vmatpush3.bf16.msra.mxu1 %v3035_v7  ;;  %v3052_v24 = vld [vmem:[%s4137_s26 + $0x48] sm:$0xff]   ;;  %v3056_v28 = vld [vmem:[%s4137_s26 + $0x40] sm:$0xff]   ;;  %v3063_v34 = vld [vmem:[%s4137_s26 + $0x178] sm:$0xff]  }
  0x28   : > { %2789 = vmatprep.subr.bf16.mxu1 %v3038_v10  ;;  %v3053_v25 = vld [vmem:[%s4137_s26 + $0x8] sm:$0xff]   ;;  %v3057_v29 = vld [vmem:[%s4137_s26] sm:$0xff]   ;;  %v3067_v37 = vld [vmem:[%s4137_s26 + $0x138] sm:$0xff]  }
  0x29   : > { %2768 = vmatpush3.bf16.msra.mxu0 %v3037_v9  ;;  %v3054_v26 = vld [vmem:[%s4137_s26 + $0xc8] sm:$0xff]   ;;  %v3058_v30 = vld [vmem:[%s4137_s26 + $0xc0] sm:$0xff]   ;;  %v3068_v39 = vld [vmem:[%s4137_s26 + $0x170] sm:$0xff]  }
  0x2a   : > { %2769 = vmatprep.subr.bf16.mxu0 %v3040_v12  ;;  %v3055_v27 = vld [vmem:[%s4137_s26 + $0x88] sm:$0xff]   ;;  %v3059_v31 = vld [vmem:[%s3584_s30] ss:$28 sps:$4 sm:$0xff]   ;;  %v3069_v40 = vld [vmem:[%s4137_s26 + $0x130] sm:$0xff]  }
  0x2b   : > { %2790 = vmatpush3.bf16.msra.mxu1 %v3039_v11  ;;  %v3061_v32 = vld [vmem:[%s3584_s30 + $0x4] ss:$28 sps:$4 sm:$0xff]   ;;  %v3066_v36 = vld [vmem:[%s3584_s30 + $0xc] ss:$28 sps:$4 sm:$0xff]   ;;  %v3074_v45 = vld [vmem:[%s4137_s26 + $0x158] sm:$0xff]  }
  0x2c   : > { %2791 = vmatprep.subr.bf16.mxu1 %v3042_v14  ;;  %v3062_v33 = vld [vmem:[%s4137_s26 + $0x80] sm:$0xff]   ;;  %1071 = vmatprep.mubr.bf16.mxu0 %v3061_v32  ;;  %v3070_v41 = vld [vmem:[%s4137_s26 + $0x168] sm:$0xff]   ;;  %v3075_v46 = vld [vmem:[%s4137_s26 + $0x118] sm:$0xff]  }
  0x2d   : > { %2770 = vmatpush3.bf16.msra.mxu0 %v3041_v13  ;;  %v3064_v35 = vld [vmem:[%s3584_s30 + $0x8] ss:$28 sps:$4 sm:$0xff]   ;;  %1112 = vmatprep.mubr.bf16.mxu1 %v3066_v36  ;;  %v3076_v47 = vld [vmem:[%s4137_s26 + $0x150] sm:$0xff]   ;;  %v3087_v57 = vld [vmem:[%s4139_s3 + $0x38] sm:$0xff]  }
  0x2e   : > { %2771 = vmatprep.subr.bf16.mxu0 %v3044_v16  ;;  %v3071_v42 = vld [vmem:[%s4137_s26 + $0x128] sm:$0xff]   ;;  %v3072_v43 = vld [vmem:[%s4137_s26 + $0x160] sm:$0xff]   ;;  %v3077_v49 = vld [vmem:[%s4137_s26 + $0x110] sm:$0xff]  }
  0x2f   : > { %2792 = vmatpush3.bf16.msra.mxu1 %v3043_v15  ;;  %v3073_v44 = vld [vmem:[%s4137_s26 + $0x120] sm:$0xff]   ;;  %v3085_v50 = vld [vmem:[%s3584_s30 + $0x14] ss:$28 sps:$4 sm:$0xff]   ;;  %v3078_v51 = vld [vmem:[%s4137_s26 + $0x148] sm:$0xff]  }
  0x30   : > { %2793 = vmatprep.subr.bf16.mxu1 %v3046_v18  ;;  %v3082_v48 = vld [vmem:[%s4137_s26 + $0x180] sm:$0xff]   ;;  %v3086_v52 = vld [vmem:[%s3584_s30 + $0x18] ss:$28 sps:$4 sm:$0xff]   ;;  %v3079_v53 = vld [vmem:[%s4137_s26 + $0x108] sm:$0xff]  }
  0x31   : > { %2772 = vmatpush3.bf16.msra.mxu0 %v3045_v17  ;;  %v3080_v54 = vld [vmem:[%s4137_s26 + $0x140] sm:$0xff]   ;;  %v3083_v56 = vld [vmem:[%s3584_s30 + $0x10] ss:$28 sps:$4 sm:$0xff]   ;;  %v3091_v61 = vld [vmem:[%s4139_s3 + $0x18] sm:$0xff]   ;;  %s2576_s30 = sshll.u32 %s3764_s25, 3 }
  0x32   : > { %2773 = vmatprep.subr.bf16.mxu0 %v3048_v20  ;;  %v3081_v55 = vld [vmem:[%s4137_s26 + $0x100] sm:$0xff]   ;;  %v3088_v58 = vld [vmem:[%s4139_s3 + $0x30] sm:$0xff]   ;;  %v3089_v59 = vld [vmem:[%s4139_s3 + $0x28] sm:$0xff]   ;;  %s3770_s22 = scalar_lea.vmem [#allocation2], %s2576_s30  ;;  %s2757_s30 = sshll.u32 %s3466_s0, 7 }
  0x33   : > { %2794 = vmatpush3.bf16.msra.mxu1 %v3047_v19  ;;  %v3090_v60 = vld [vmem:[%s4139_s3 + $0x20] sm:$0xff]   ;;  %v3092_v62 = vld [vmem:[%s4139_s3 + $0x10] sm:$0xff]   ;;  %v3093_v63 = vld [vmem:[%s4139_s3 + $0x8] sm:$0xff]   ;;  %s2461_s21 = sshll.u32 %s3770_s22, 4  ;;  %s3985_s21 = int_to_ptr.vmem [resolvable:$true] %s2461_s21 }
  0x34   : > { %2795 = vmatprep.subr.bf16.mxu1 %v3050_v22  ;;  %v3094_v0 = vld [vmem:[%s4139_s3] sm:$0xff]   ;;  %v3095_v1 = vld [vmem:[%s4102_s5 + $0x18] sm:$0xff]   ;;  %v3096_v36 = vld [vmem:[%s4102_s5 + $0x10] sm:$0xff]   ;;  %s3249_s19 = scalar_lea.vmem %s3985_s21, 128  ;;  %p3256_p0 = scmp.lt.s32.totalorder %s3985_s21, %s3254_s24 }
  0x35   : > { %2774 = vmatpush3.bf16.msra.mxu0 %v3049_v21  ;;  %v2579_v14 = vld [vmem:[%s4140_s27] ss:$0 sm:$0xff]  ;;  %s3991_s27 = scalar_lea.hbm %s4114_s17, %s2757_s30  ;;  %p3250_p11 = scmp.ne.s32.totalorder %s3985_s21, %s3249_s19 }
  0x36   : > { %2775 = vmatprep.subr.bf16.mxu0 %v3052_v24 }
  0x37   : > { %2796 = vmatpush3.bf16.msra.mxu1 %v3051_v23  ;;  %p3251_p12 = pnand %p3250_p11, %p3483_p5 }
  0x38   : > { %2797 = vmatprep.subr.bf16.mxu1 %v3054_v26 }
  0x39   : > { %2776 = vmatpush3.bf16.msra.mxu0 %v3053_v25  ;;  %p3252_p13 = pneg %p3251_p12 }
  0x3a   : > { %2777 = vmatprep.subr.bf16.mxu0 %v3056_v28 }
  0x3b   : > { %2798 = vmatpush3.bf16.msra.mxu1 %v3055_v27 }
  0x3c   : > { %2799 = vmatprep.subr.bf16.mxu1 %v3058_v30 }
  0x3d   : > { %2778 = vmatpush3.bf16.msra.mxu0 %v3057_v29 }
  0x3e   : > { %2807 = vmatprep.subr.bf16.mxu0 %v3063_v34 }
  0x3f   : > { %2800 = vmatpush3.bf16.msra.mxu1 %v3062_v33 }
  0x40   : > { %1072 = vmatmul.mubr.bf16.vlgmr.msra.gmra.mxu0 %v3059_v31  ;;  %2872 = vmatprep.subr.bf16.mxu1 %v3341_v38 }
  0x41   : > { %2808 = vmatpush3.bf16.msra.mxu0 %v3067_v37  ;;  %1153 = vmatprep.mubr.bf16.mxu0 %v3085_v50  ;;  %v3097_v37 = vld [vmem:[%s4102_s5 + $0x8] sm:$0xff]   ;;  %v3099_v50 = vld [vmem:[%s4104_s7] sm:$0x3f]  }
  0x42   : > { %1113 = vmatmul.mubr.bf16.vlgmr.msra.gmra.mxu1 %v3064_v35  ;;  %2809 = vmatprep.subr.bf16.mxu0 %v3068_v39  ;;  %v3098_v39 = vld [vmem:[%s4102_s5] sm:$0xff]  }
  0x43   : > { %2874 = vmatprep.mubr.msk.bf16.mxu1 %vm3342_vm0, %v3341_v38  ;;  %2873 = vmatpush3.bf16.msra.mxu1 %v3082_v48 }
  0x44   : > { %2878 = vmatprep.subr.bf16.mxu1 %v3341_v38 }
  0x45   : > { %2810 = vmatpush3.bf16.msra.mxu0 %v3069_v40  ;;  %v2637_v40 = vld [vmem:[%s4101_s4] ss:$0 sm:$0xff] }
  0x46   : > { %2811 = vmatprep.subr.bf16.mxu0 %v3070_v41 }
  0x49   : > { %2812 = vmatpush3.bf16.msra.mxu0 %v3071_v42 }
  0x4a   : > { %2813 = vmatprep.subr.bf16.mxu0 %v3072_v43  ;;  %2875 = vmatmul.mubr.msk.bf16.vlgmr.msra.gmra.mxu1 %vm1035_vm1, %v3086_v52  ;;  %v3100_v52 = vld [vmem:[%s4106_s9 + $0x38] sm:$0xff]  }
  0x4b   : > { %2894 = vmatprep.mubr.msk.bf16.mxu1 %vm3342_vm0, %v3341_v38  ;;  %2879 = vmatpush3.bf16.msra.mxu1 %v3087_v57  ;;  %v3105_v57 = vld [vmem:[%s4106_s9 + $0x10] sm:$0xff]  }
  0x4c   : > { %2880 = vmatprep.subr.bf16.mxu1 %v3341_v38 }
  0x4d   : > { %2814 = vmatpush3.bf16.msra.mxu0 %v3073_v44 }
  0x4e   : > { %2815 = vmatprep.subr.bf16.mxu0 %v3074_v45 }
  0x4f   : > { %2881 = vmatpush3.bf16.msra.mxu1 %v3088_v58  ;;  %v2646_v58 = vld [vmem:[%s4103_s6] ss:$0 sm:$0xff] }
  0x50   : > { %2882 = vmatprep.subr.bf16.mxu1 %v3341_v38 }
  0x51   : > { %2816 = vmatpush3.bf16.msra.mxu0 %v3075_v46 }
  0x52   : > { %2817 = vmatprep.subr.bf16.mxu0 %v3076_v47 }
  0x53   : > { %2883 = vmatpush3.bf16.msra.mxu1 %v3089_v59 }
  0x54   : > { %2884 = vmatprep.subr.bf16.mxu1 %v3341_v38 }
  0x55   : > { %2818 = vmatpush3.bf16.msra.mxu0 %v3077_v49 }
  0x56   : > { %2819 = vmatprep.subr.bf16.mxu0 %v3078_v51  ;;  %v1428_v51 = vsel %vm1426_vm3, %v3099_v50, 0 }
  0x57   : > { %2885 = vmatpush3.bf16.msra.mxu1 %v3090_v60 }
  0x58   : > { %2886 = vmatprep.subr.bf16.mxu1 %v3341_v38 }
  0x59   : > { %2820 = vmatpush3.bf16.msra.mxu0 %v3079_v53  ;;  %v3101_v53 = vld [vmem:[%s4106_s9 + $0x30] sm:$0xff]  }
  0x5a   : > { %2821 = vmatprep.subr.bf16.mxu0 %v3080_v54  ;;  %v3102_v54 = vld [vmem:[%s4106_s9 + $0x28] sm:$0xff]  }
  0x5b   : > { %2887 = vmatpush3.bf16.msra.mxu1 %v3091_v61 }
  0x5c   : > { %2888 = vmatprep.subr.bf16.mxu1 %v3341_v38 }
  0x5d   : > { %2822 = vmatpush3.bf16.msra.mxu0 %v3081_v55  ;;  %v3103_v55 = vld [vmem:[%s4106_s9 + $0x20] sm:$0xff]  }
  0x5e   : > { %2898 = vmatprep.subr.bf16.mxu0 %v3341_v38 }
  0x5f   : > { %2889 = vmatpush3.bf16.msra.mxu1 %v3092_v62 }
  0x60   : > { %1154 = vmatmul.mubr.bf16.vlgmr.msra.gmra.mxu0 %v3083_v56  ;;  %2890 = vmatprep.subr.bf16.mxu1 %v3341_v38  ;;  %v3104_v56 = vld [vmem:[%s4106_s9 + $0x18] sm:$0xff]  }
  0x61   : > { %2906 = vmatprep.mubr.msk.bf16.mxu0 %vm3342_vm0, %v3341_v38  ;;  %2899 = vmatpush3.bf16.msra.mxu0 %v3095_v1 }
  0x62   : > { %2900 = vmatprep.subr.bf16.mxu0 %v3341_v38 }
  0x63   : > { %2891 = vmatpush3.bf16.msra.mxu1 %v3093_v63 }
  0x64   : > { %2892 = vmatprep.subr.bf16.mxu1 %v3341_v38 }
  0x65   : > { %2901 = vmatpush3.bf16.msra.mxu0 %v3096_v36  ;;  %v3128_v36 = vld [vmem:[%s4112_s15 + $0x120] ss:$28 sps:$4 sm:$0xff]  }
  0x66   : > { %2902 = vmatprep.subr.bf16.mxu0 %v3341_v38 }
  0x67   : > { %2893 = vmatpush3.bf16.msra.mxu1 %v3094_v0 }
  0x68   : > { %2910 = vmatprep.subr.bf16.mxu1 %v3341_v38 }
  0x69   : > { %2903 = vmatpush3.bf16.msra.mxu0 %v3097_v37  ;;  %v3136_v37 = vld [vmem:[%s4112_s15 + $0xec] ss:$28 sps:$4 sm:$0xff]  }
  0x6a   : > { %2904 = vmatprep.subr.bf16.mxu0 %v3341_v38 }
  0x6d   : > { %2905 = vmatpush3.bf16.msra.mxu0 %v3098_v39  ;;  %v3134_v39 = vld [vmem:[%s4112_s15 + $0xe8] ss:$28 sps:$4 sm:$0xff]  }
  0x6e   : > { %2916 = vmatprep.subr.bf16.mxu0 %v3341_v38 }
 0x100   : > { %v2779_v5 = vpop.f32.mrf.mxu0 }
 0x102   : > { %v2801_v2 = vpop.f32.mrf.mxu1  ;;  %v2780_v8 = vpop.f32.mrf.mxu0 }
 0x103   : > { %v2781_v13 = vadd.f32 %v2780_v8, %v2779_v5  ;;  %v3107_v5 = vld [vmem:[%s4106_s9] sm:$0xff]  }
 0x104   : > { %v2802_v3 = vpop.f32.mrf.mxu1  ;;  %v2782_v11 = vpop.f32.mrf.mxu0 }
 0x105   : > { %v1074_v16 = vadd.f32 %v2781_v13, %v2579_v14  ;;  %v2803_v17 = vadd.f32 %v2802_v3, %v2801_v2 }
 0x106   : > { %v2804_v4 = vpop.f32.mrf.mxu1  ;;  %v2783_v15 = vpop.f32.mrf.mxu0 }
 0x107   : > { %v2784_v18 = vadd.f32 %v2783_v15, %v2782_v11  ;;  %v1115_v21 = vadd.f32 %v2803_v17, %v1074_v16  ;;  %v2657_v16 = vld [vmem:[%s4107_s10] ss:$0 sm:$0xff] }
 0x108   : > { %v2805_v6 = vpop.f32.mrf.mxu1 }
 0x109   : > { %v1077_v22 = vadd.f32 %v2784_v18, %v2579_v14  ;;  %v2806_v23 = vadd.f32 %v2805_v6, %v2804_v4  ;;  %v3106_v4 = vld [vmem:[%s4106_s9 + $0x8] sm:$0xff]   ;;  %v3108_v14 = vld [vmem:[%s4108_s11] sm:$0x3f]  }
 0x10a   : > { %v1196_v7 = vpop.f32.mrf.mxu1  ;;  %v1614_v15 = vsel %vm1426_vm3, %v3108_v14, 0 }
 0x10b   : > { %v1118_v28 = vadd.f32 %v2806_v23, %v1077_v22 }
 0x10c   : > { %v2876_v9 = vpop.f32.mrf.mxu1 }
 0x10e   : > { %v1199_v10 = vpop.f32.mrf.mxu1 }
 0x110   : > { %v2877_v12 = vpop.f32.mrf.mxu1 }
 0x120   : > { %v2823_v19 = vpop.f32.mrf.mxu0 }
 0x122   : > { %v2824_v20 = vpop.f32.mrf.mxu0 }
 0x123   : > { %v2825_v24 = vadd.f32 %v2824_v20, %v2823_v19 }
 0x124   : > { %v2826_v25 = vpop.f32.mrf.mxu0 }
 0x125   : > { %v1156_v26 = vadd.f32 %v2825_v24, %v1115_v21 }
 0x126   : > { %v2827_v27 = vpop.f32.mrf.mxu0 }
 0x127   : > { %v2828_v29 = vadd.f32 %v2827_v27, %v2826_v25  ;;  %v1197_v30 = vadd.f32 %v1196_v7, %v1156_v26  ;;  %v2652_v7 = vld [vmem:[%s4105_s8] ss:$0 sm:$0xff]  ;;  %v3109_v25 = vld [vmem:[%s4110_s13 + $0x18] sm:$0xff]   ;;  %v3110_v27 = vld [vmem:[%s4110_s13 + $0x10] sm:$0xff]  }
 0x129   : > { %v1159_v31 = vadd.f32 %v2828_v29, %v1118_v28  ;;  %v1203_v33 = vmax.f32 %v1197_v30, 0.0  ;;  %v3111_v28 = vld [vmem:[%s4110_s13 + $0x8] sm:$0xff]   ;;  %v3112_v29 = vld [vmem:[%s4110_s13] sm:$0xff]  }
 0x12a   : > { %v3115_v30 = vld [vmem:[%s4112_s15 + $0x18c] ss:$28 sps:$4 sm:$0xff]  }
 0x12b   : > { %v1200_v32 = vadd.f32 %v1199_v10, %v1159_v31  ;;  %v3116_v31 = vld [vmem:[%s4112_s15 + $0x190] ss:$28 sps:$4 sm:$0xff]  }
 0x12d   : > { %v1204_v34 = vmax.f32 %v1200_v32, 0.0  ;;  %v3118_v32 = vld [vmem:[%s4112_s15 + $0x194] ss:$28 sps:$4 sm:$0xff]  }
 0x12f   : > { %v1205_v35 = vpack.c.bf16 %v1204_v34, %v1203_v33  ;;  %v3124_v33 = vld [vmem:[%s4112_s15 + $0x15c] ss:$28 sps:$4 sm:$0xff]  }
 0x130   : > { %v3122_v34 = vld [vmem:[%s4112_s15 + $0x158] ss:$28 sps:$4 sm:$0xff]  }
 0x131   : > { %2895 = vmatmul.mubr.bf16.vlgmr.msra.gmra.mxu1 %v1205_v35  ;;  %v3130_v35 = vld [vmem:[%s4112_s15 + $0x124] ss:$28 sps:$4 sm:$0xff]  }
 0x132   : > { %2912 = vmatprep.mubr.msk.bf16.mxu1 %vm3342_vm0, %v3341_v38  ;;  %2911 = vmatpush3.bf16.msra.mxu1 %v1428_v51 }
 0x133   : > { %2936 = vmatprep.subr.bf16.mxu1 %v3341_v38 }
 0x1f1   : > { %v1311_v41 = vpop.f32.mrf.mxu1 }
 0x1f2   : > { %v1312_v43 = vadd.f32 %v2637_v40, %v1311_v41  ;;  %v3140_v41 = vld [vmem:[%s4112_s15 + $0xb0] ss:$28 sps:$4 sm:$0xff]  }
 0x1f3   : > { %v2896_v42 = vpop.f32.mrf.mxu1 }
 0x1f4   : > { %v1318_v47 = vmax.f32 %v1312_v43, 0.0  ;;  %v3148_v42 = vld [vmem:[%s4112_s15 + $0x7c] ss:$28 sps:$4 sm:$0xff]  }
 0x1f5   : > { %v1314_v44 = vpop.f32.mrf.mxu1  ;;  %v3146_v43 = vld [vmem:[%s4112_s15 + $0x78] ss:$28 sps:$4 sm:$0xff]  }
 0x1f6   : > { %v1315_v45 = vadd.f32 %v2637_v40, %v1314_v44  ;;  %v3142_v40 = vld [vmem:[%s4112_s15 + $0xb4] ss:$28 sps:$4 sm:$0xff]   ;;  %v2666_v44 = vld [vmem:[%s4109_s12] ss:$0 sm:$0xff] }
 0x1f7   : > { %v2897_v46 = vpop.f32.mrf.mxu1 }
 0x1f8   : > { %v1319_v48 = vmax.f32 %v1315_v45, 0.0 }
 0x1fa   : > { %v1320_v49 = vpack.c.bf16 %v1319_v48, %v1318_v47 }
 0x1fc   : > { %2907 = vmatmul.mubr.msk.bf16.vlgmr.msra.gmra.mxu0 %vm1360_vm2, %v1320_v49 }
 0x1fd   : > { %2932 = vmatprep.mubr.msk.bf16.mxu0 %vm3342_vm0, %v3341_v38  ;;  %2917 = vmatpush3.bf16.msra.mxu0 %v3100_v52 }
 0x1fe   : > { %2918 = vmatprep.subr.bf16.mxu0 %v3341_v38 }
 0x201   : > { %2919 = vmatpush3.bf16.msra.mxu0 %v3101_v53  ;;  %v3113_v53 = vld [vmem:[%s4112_s15 + $0x188] ss:$28 sps:$4 sm:$0xff]  }
 0x202   : > { %2920 = vmatprep.subr.bf16.mxu0 %v3341_v38 }
 0x205   : > { %2921 = vmatpush3.bf16.msra.mxu0 %v3102_v54 }
 0x206   : > { %2922 = vmatprep.subr.bf16.mxu0 %v3341_v38 }
 0x209   : > { %2923 = vmatpush3.bf16.msra.mxu0 %v3103_v55  ;;  %v3121_v55 = vld [vmem:[%s4112_s15 + $0x154] ss:$28 sps:$4 sm:$0xff]  }
 0x20a   : > { %2924 = vmatprep.subr.bf16.mxu0 %v3341_v38 }
 0x20d   : > { %2925 = vmatpush3.bf16.msra.mxu0 %v3104_v56  ;;  %v3119_v56 = vld [vmem:[%s4112_s15 + $0x150] ss:$28 sps:$4 sm:$0xff]  }
 0x20e   : > { %2926 = vmatprep.subr.bf16.mxu0 %v3341_v38 }
 0x211   : > { %2927 = vmatpush3.bf16.msra.mxu0 %v3105_v57  ;;  %v3127_v57 = vld [vmem:[%s4112_s15 + $0x11c] ss:$28 sps:$4 sm:$0xff]  }
 0x212   : > { %2928 = vmatprep.subr.bf16.mxu0 %v3341_v38 }
 0x215   : > { %2929 = vmatpush3.bf16.msra.mxu0 %v3106_v4  ;;  %v3152_v4 = vld [vmem:[%s4112_s15 + $0x40] ss:$28 sps:$4 sm:$0xff]  }
 0x216   : > { %2930 = vmatprep.subr.bf16.mxu0 %v3341_v38 }
 0x219   : > { %2931 = vmatpush3.bf16.msra.mxu0 %v3107_v5  ;;  %v3157_v5 = vld [vmem:[%s4112_s15 + $0x4] ss:$28 sps:$4 sm:$0xff]  }
 0x21a   : > { %2178 = vmatprep.subr.bf16.mxu0 %v3118_v32  ;;  %v3179_v32 = vld [vmem:[%s4112_s15 + $0xbc] ss:$28 sps:$4 sm:$0xff]  }
 0x2bc   : > { %v1398_v59 = vpop.f32.mrf.mxu0 }
 0x2bd   : > { %v1399_v61 = vadd.f32 %v2646_v58, %v1398_v59  ;;  %v3133_v59 = vld [vmem:[%s4112_s15 + $0xe4] ss:$28 sps:$4 sm:$0xff]  }
 0x2be   : > { %v2908_v60 = vpop.f32.mrf.mxu0 }
 0x2bf   : > { %v1405_v1 = vmax.f32 %v1399_v61, 0.0  ;;  %v3131_v60 = vld [vmem:[%s4112_s15 + $0xe0] ss:$28 sps:$4 sm:$0xff]   ;;  %v3139_v61 = vld [vmem:[%s4112_s15 + $0xac] ss:$28 sps:$4 sm:$0xff]  }
 0x2c0   : > { %v1401_v62 = vpop.f32.mrf.mxu0 }
 0x2c1   : > { %v1402_v63 = vadd.f32 %v2646_v58, %v1401_v62  ;;  %v3125_v58 = vld [vmem:[%s4112_s15 + $0x118] ss:$28 sps:$4 sm:$0xff]   ;;  %v3137_v62 = vld [vmem:[%s4112_s15 + $0xa8] ss:$28 sps:$4 sm:$0xff]  }
 0x2c2   : > { %v2909_v0 = vpop.f32.mrf.mxu0 }
 0x2c3   : > { %v1406_v2 = vmax.f32 %v1402_v63, 0.0  ;;  %v3145_v63 = vld [vmem:[%s4112_s15 + $0x74] ss:$28 sps:$4 sm:$0xff]  }
 0x2c4   : > { %v3143_v0 = vld [vmem:[%s4112_s15 + $0x70] ss:$28 sps:$4 sm:$0xff]  }
 0x2c5   : > { %v1407_v3 = vpack.c.bf16 %v1406_v2, %v1405_v1  ;;  %v3151_v1 = vld [vmem:[%s4112_s15 + $0x3c] ss:$28 sps:$4 sm:$0xff]   ;;  %v3154_v2 = vld [vmem:[%s4112_s15 + $0x44] ss:$28 sps:$4 sm:$0xff]  }
 0x2c7   : > { %2913 = vmatmul.mubr.msk.bf16.vlgmr.msra.gmra.mxu1 %vm1422_vm4, %v1407_v3  ;;  %v3149_v3 = vld [vmem:[%s4112_s15 + $0x38] ss:$28 sps:$4 sm:$0xff]  }
 0x2c8   : > { %2938 = vmatprep.mubr.msk.bf16.mxu1 %vm3342_vm0, %v3341_v38  ;;  %2937 = vmatpush3.bf16.msra.mxu1 %v1614_v15 }
 0x2c9   : > { %2942 = vmatprep.subr.bf16.mxu1 %v3341_v38 }
 0x387   : > { %v1464_v6 = vpop.f32.mrf.mxu1 }
 0x388   : > { %v1465_v10 = vadd.f32 %v2652_v7, %v1464_v6  ;;  %v3160_v6 = vld [vmem:[%s4112_s15 + $0xc] ss:$28 sps:$4 sm:$0xff]  }
 0x389   : > { %v2914_v8 = vpop.f32.mrf.mxu1 }
 0x38a   : > { %v3158_v8 = vld [vmem:[%s4112_s15 + $0x8] ss:$28 sps:$4 sm:$0xff]  }
 0x38b   : > { %v1467_v9 = vpop.f32.mrf.mxu1 }
 0x38c   : > { %v1468_v11 = vadd.f32 %v2652_v7, %v1467_v9  ;;  %v3155_v7 = vld [vmem:[%s4112_s15] ss:$28 sps:$4 sm:$0xff]  }
 0x38d   : > { %v2915_v12 = vpop.f32.mrf.mxu1  ;;  %v3163_v9 = vld [vmem:[%s4112_s15 + $0x19c] ss:$28 sps:$4 sm:$0xff]  }
 0x38e   : > { %v1471_v13 = vpack.c.bf16 %v1468_v11, %v1465_v10  ;;  %v3343_v10 = vmov 0   ;;  %v2669_v11 = vld [vmem:[%s4111_s14] ss:$0 sm:$0xff] }
 0x390   : > { %2762 = vst [vmem:[%s3770_s22] sm:$0xff] %v1471_v13   ;;  %2933 = vmatmul.mubr.bf16.vlgmr.msra.gmra.mxu0 %v1471_v13  ;;  %s3255_s22 = scalar_lea.vmem %s3254_s24, 256 }
 0x391   : > { %2179 = vmatpush1.bf16.msra.mxu0 %v3116_v31  ;;  %2210 = vmatprep.mubr.bf16.mxu0 %v3343_v10  ;;  %v3176_v31 = vld [vmem:[%s4112_s15 + $0xf8] ss:$28 sps:$4 sm:$0xff]   ;;  %p3257_p1 = scmp.lt.s32.totalorder %s3255_s22, %s3249_s19 }
 0x392   : > { %2180 = vmatprep.subr.bf16.mxu0 %v3124_v33  ;;  %v3177_v33 = vld [vmem:[%s4112_s15 + $0xb8] ss:$28 sps:$4 sm:$0xff]  }
 0x393   : > { %p3258_p2 = por %p3257_p1, %p3256_p0 }
 0x395   : > { %2181 = vmatpush1.bf16.msra.mxu0 %v3122_v34  ;;  %v3180_v34 = vld [vmem:[%s4112_s15 + $0xc0] ss:$28 sps:$4 sm:$0xff]   ;;  %p3259_p3 = pnand %p3258_p2, %p3252_p13 }
 0x396   : > { %2182 = vmatprep.subr.bf16.mxu0 %v3130_v35  ;;  %v3183_v35 = vld [vmem:[%s4112_s15 + $0x84] ss:$28 sps:$4 sm:$0xff]  }
 0x399   : > { %2183 = vmatpush1.bf16.msra.mxu0 %v3128_v36  ;;  %v3181_v36 = vld [vmem:[%s4112_s15 + $0x80] ss:$28 sps:$4 sm:$0xff]  }
 0x39a   : > { %2184 = vmatprep.subr.bf16.mxu0 %v3136_v37  ;;  %v3184_v37 = vld [vmem:[%s4112_s15 + $0x88] ss:$28 sps:$4 sm:$0xff]  }
 0x39d   : > { %2185 = vmatpush1.bf16.msra.mxu0 %v3134_v39  ;;  %v3187_v39 = vld [vmem:[%s4112_s15 + $0x4c] ss:$28 sps:$4 sm:$0xff]  }
 0x39e   : > { %2186 = vmatprep.subr.bf16.mxu0 %v3142_v40  ;;  %v3185_v40 = vld [vmem:[%s4112_s15 + $0x48] ss:$28 sps:$4 sm:$0xff]  }
 0x3a1   : > { %2187 = vmatpush1.bf16.msra.mxu0 %v3140_v41  ;;  %v3188_v41 = vld [vmem:[%s4112_s15 + $0x50] ss:$28 sps:$4 sm:$0xff]  }
 0x3a2   : > { %2188 = vmatprep.subr.bf16.mxu0 %v3148_v42  ;;  %v3191_v42 = vld [vmem:[%s4112_s15 + $0x14] ss:$28 sps:$4 sm:$0xff]  }
 0x3a5   : > { %2189 = vmatpush1.bf16.msra.mxu0 %v3146_v43  ;;  %v3189_v43 = vld [vmem:[%s4112_s15 + $0x10] ss:$28 sps:$4 sm:$0xff]  }
 0x3a6   : > { %2190 = vmatprep.subr.bf16.mxu0 %v3154_v2 }
 0x3a9   : > { %2191 = vmatpush1.bf16.msra.mxu0 %v3152_v4 }
 0x3aa   : > { %2192 = vmatprep.subr.bf16.mxu0 %v3160_v6 }
 0x3ad   : > { %2193 = vmatpush1.bf16.msra.mxu0 %v3158_v8 }
 0x3ae   : > { %2954 = vmatprep.subr.bf16.mxu0 %v3341_v38 }
 0x450   : > { %v1586_v17 = vpop.f32.mrf.mxu0 }
 0x451   : > { %v1587_v19 = vadd.f32 %v2657_v16, %v1586_v17 }
 0x452   : > { %v2934_v18 = vpop.f32.mrf.mxu0 }
 0x453   : > { %v1593_v23 = vmax.f32 %v1587_v19, 0.0 }
 0x454   : > { %v1589_v20 = vpop.f32.mrf.mxu0 }
 0x455   : > { %v1590_v21 = vadd.f32 %v2657_v16, %v1589_v20  ;;  %v3161_v20 = vld [vmem:[%s4112_s15 + $0x198] ss:$28 sps:$4 sm:$0xff]  }
 0x456   : > { %v2935_v22 = vpop.f32.mrf.mxu0 }
 0x457   : > { %v1594_v24 = vmax.f32 %v1590_v21, 0.0  ;;  %v3164_v21 = vld [vmem:[%s4112_s15 + $0x1a0] ss:$28 sps:$4 sm:$0xff]  }
 0x459   : > { %v1595_v26 = vpack.c.bf16 %v1594_v24, %v1593_v23  ;;  %v3167_v23 = vld [vmem:[%s4112_s15 + $0x164] ss:$28 sps:$4 sm:$0xff]  }
 0x45a   : > { %v3165_v24 = vld [vmem:[%s4112_s15 + $0x160] ss:$28 sps:$4 sm:$0xff]  }
 0x45b   : > { %2939 = vmatmul.mubr.msk.bf16.vlgmr.msra.gmra.mxu1 %vm1422_vm4, %v1595_v26  ;;  %v3171_v26 = vld [vmem:[%s4112_s15 + $0x12c] ss:$28 sps:$4 sm:$0xff]  }
 0x45c   : > { %2943 = vmatpush3.bf16.msra.mxu1 %v3109_v25  ;;  %2950 = vmatprep.mubr.msk.bf16.mxu1 %vm3342_vm0, %v3341_v38  ;;  %v3168_v25 = vld [vmem:[%s4112_s15 + $0x168] ss:$28 sps:$4 sm:$0xff]  }
 0x45d   : > { %2944 = vmatprep.subr.bf16.mxu1 %v3341_v38 }
 0x460   : > { %2945 = vmatpush3.bf16.msra.mxu1 %v3110_v27  ;;  %v3169_v27 = vld [vmem:[%s4112_s15 + $0x128] ss:$28 sps:$4 sm:$0xff]  }
 0x461   : > { %2946 = vmatprep.subr.bf16.mxu1 %v3341_v38 }
 0x464   : > { %2947 = vmatpush3.bf16.msra.mxu1 %v3111_v28  ;;  %v3172_v28 = vld [vmem:[%s4112_s15 + $0x130] ss:$28 sps:$4 sm:$0xff]  }
 0x465   : > { %2948 = vmatprep.subr.bf16.mxu1 %v3341_v38 }
 0x468   : > { %2949 = vmatpush3.bf16.msra.mxu1 %v3112_v29  ;;  %v3175_v29 = vld [vmem:[%s4112_s15 + $0xf4] ss:$28 sps:$4 sm:$0xff]  }
 0x469   : > { %2135 = vmatprep.subr.bf16.mxu1 %v3115_v30  ;;  %v3173_v30 = vld [vmem:[%s4112_s15 + $0xf0] ss:$28 sps:$4 sm:$0xff]  }
 0x51b   : > { %v1650_v45 = vpop.f32.mrf.mxu1 }
 0x51c   : > { %v1651_v47 = vadd.f32 %v2666_v44, %v1650_v45 }
 0x51d   : > { %v2940_v46 = vpop.f32.mrf.mxu1 }
 0x51e   : > { %v1657_v51 = vmax.f32 %v1651_v47, 0.0 }
 0x51f   : > { %v1653_v48 = vpop.f32.mrf.mxu1 }
 0x520   : > { %v1654_v49 = vadd.f32 %v2666_v44, %v1653_v48  ;;  %v3192_v44 = vld [vmem:[%s4112_s15 + $0x18] ss:$28 sps:$4 sm:$0xff]  }
 0x521   : > { %v2941_v50 = vpop.f32.mrf.mxu1 }
 0x522   : > { %v1658_v52 = vmax.f32 %v1654_v49, 0.0 }
 0x524   : > { %v1659_v54 = vpack.c.bf16 %v1658_v52, %v1657_v51 }
 0x526   : > { %2951 = vmatmul.mubr.msk.bf16.vlgmr.msra.gmra.mxu1 %vm1360_vm2, %v1659_v54 }
 0x527   : > { %2136 = vmatpush1.bf16.msra.mxu1 %v3113_v53  ;;  %2167 = vmatprep.mubr.bf16.mxu1 %v3343_v10 }
 0x528   : > { %2137 = vmatprep.subr.bf16.mxu1 %v3121_v55 }
 0x52b   : > { %2138 = vmatpush1.bf16.msra.mxu1 %v3119_v56 }
 0x52c   : > { %2139 = vmatprep.subr.bf16.mxu1 %v3127_v57 }
 0x52f   : > { %2140 = vmatpush1.bf16.msra.mxu1 %v3125_v58 }
 0x530   : > { %2141 = vmatprep.subr.bf16.mxu1 %v3133_v59 }
 0x533   : > { %2142 = vmatpush1.bf16.msra.mxu1 %v3131_v60 }
 0x534   : > { %2143 = vmatprep.subr.bf16.mxu1 %v3139_v61 }
 0x537   : > { %2144 = vmatpush1.bf16.msra.mxu1 %v3137_v62 }
 0x538   : > { %2145 = vmatprep.subr.bf16.mxu1 %v3145_v63 }
 0x53b   : > { %2146 = vmatpush1.bf16.msra.mxu1 %v3143_v0 }
 0x53c   : > { %2147 = vmatprep.subr.bf16.mxu1 %v3151_v1 }
 0x53f   : > { %2148 = vmatpush1.bf16.msra.mxu1 %v3149_v3 }
 0x540   : > { %2149 = vmatprep.subr.bf16.mxu1 %v3157_v5 }
 0x543   : > { %2150 = vmatpush1.bf16.msra.mxu1 %v3155_v7 }
 0x544   : > { %2221 = vmatprep.subr.bf16.mxu1 %v3163_v9 }
 0x5e6   : > { %v1736_v12 = vpop.f32.mrf.mxu1 }
 0x5e7   : > { %v1737_v14 = vadd.f32 %v2669_v11, %v1736_v12 }
 0x5e8   : > { %v2952_v13 = vpop.f32.mrf.mxu1 }
 0x5e9   : > { %v1743_v18 = vmax.f32 %v1737_v14, 0.0 }
 0x5ea   : > { %v1739_v15 = vpop.f32.mrf.mxu1 }
 0x5eb   : > { %v1740_v16 = vadd.f32 %v2669_v11, %v1739_v15 }
 0x5ec   : > { %v2953_v17 = vpop.f32.mrf.mxu1 }
 0x5ed   : > { %v1744_v19 = vmax.f32 %v1740_v16, 0.0 }
 0x5ef   : > { %v1745_v22 = vpack.c.bf16 %v1744_v19, %v1743_v18 }
 0x5f1   : > { %2168 = vmatmul.mubr.bf16.vlgmr.msra.gmra.mxu1 %v1745_v22  ;;  %2211 = vmatmul.mubr.bf16.vlgmr.msra.gmra.mxu0 %v1745_v22 }
 0x5f2   : > { %2222 = vmatpush1.bf16.msra.mxu1 %v3161_v20  ;;  %2955 = vmatpush3.bf16.msra.mxu0 %v3164_v21 }
 0x5f3   : > { %2223 = vmatprep.subr.bf16.mxu1 %v3167_v23  ;;  %2956 = vmatprep.subr.bf16.mxu0 %v3341_v38 }
 0x5f4   : > { %2253 = vmatprep.mubr.bf16.mxu1 %v3343_v10  ;;  %2970 = vmatprep.mubr.msk.bf16.mxu0 %vm3342_vm0, %v3341_v38 }
 0x5f6   : > { %2224 = vmatpush1.bf16.msra.mxu1 %v3165_v24  ;;  %2957 = vmatpush3.bf16.msra.mxu0 %v3168_v25 }
 0x5f7   : > { %2225 = vmatprep.subr.bf16.mxu1 %v3171_v26  ;;  %2958 = vmatprep.subr.bf16.mxu0 %v3341_v38 }
 0x5fa   : > { %2226 = vmatpush1.bf16.msra.mxu1 %v3169_v27  ;;  %2959 = vmatpush3.bf16.msra.mxu0 %v3172_v28 }
 0x5fb   : > { %2227 = vmatprep.subr.bf16.mxu1 %v3175_v29  ;;  %2960 = vmatprep.subr.bf16.mxu0 %v3341_v38 }
 0x5fe   : > { %2228 = vmatpush1.bf16.msra.mxu1 %v3173_v30  ;;  %2961 = vmatpush3.bf16.msra.mxu0 %v3176_v31 }
 0x5ff   : > { %2229 = vmatprep.subr.bf16.mxu1 %v3179_v32  ;;  %2962 = vmatprep.subr.bf16.mxu0 %v3341_v38 }
 0x602   : > { %2230 = vmatpush1.bf16.msra.mxu1 %v3177_v33  ;;  %2963 = vmatpush3.bf16.msra.mxu0 %v3180_v34 }
 0x603   : > { %2231 = vmatprep.subr.bf16.mxu1 %v3183_v35  ;;  %2964 = vmatprep.subr.bf16.mxu0 %v3341_v38 }
 0x606   : > { %2232 = vmatpush1.bf16.msra.mxu1 %v3181_v36  ;;  %2965 = vmatpush3.bf16.msra.mxu0 %v3184_v37 }
 0x607   : > { %2233 = vmatprep.subr.bf16.mxu1 %v3187_v39  ;;  %2966 = vmatprep.subr.bf16.mxu0 %v3341_v38 }
 0x60a   : > { %2234 = vmatpush1.bf16.msra.mxu1 %v3185_v40  ;;  %2967 = vmatpush3.bf16.msra.mxu0 %v3188_v41 }
 0x60b   : > { %2235 = vmatprep.subr.bf16.mxu1 %v3191_v42  ;;  %2968 = vmatprep.subr.bf16.mxu0 %v3341_v38 }
 0x60e   : > { %2236 = vmatpush1.bf16.msra.mxu1 %v3189_v43  ;;  %2969 = vmatpush3.bf16.msra.mxu0 %v3192_v44 }
 0x611   : > { %2254 = vmatmul.mubr.bf16.vlgmr.msra.gmra.mxu1 %v1745_v22  ;;  %2971 = vmatmul.mubr.bf16.vlgmr.msra.gmra.mxu0 %v1745_v22 }
 0x612   : > { %3262 = shalt.err (!%p3259_p3)
}
 0x613   : > { %s3263_s23 = scalar_lea.hbm %s3991_s27, 128  ;;  %s3267_s1 = scalar_lea.hbm %s4114_s17, 256 }
 0x614   : > { %p3264_p4 = scmp.ne.s32.totalorder %s3991_s27, %s3263_s23  ;;  %p3268_p9 = scmp.lt.s32.totalorder %s3991_s27, %s4114_s17 }
 0x615   : > { %p3269_p10 = scmp.lt.s32.totalorder %s3267_s1, %s3263_s23 }
 0x616   : > { %p3265_p7 = pnand %p3264_p4, %p3483_p5 }
 0x617   : > { %p3270_p11 = por %p3269_p10, %p3268_p9 }
 0x618   : > { %p3266_p8 = pneg %p3265_p7 }
 0x61a   : > { %p3271_p12 = pnand %p3270_p11, %p3266_p8 }
 0x61c   : > { %3274 = shalt.err (!%p3271_p12)
}
 0x61d   : > { %s3345_s19 = smov 64   ;;  %s3346_s24 = smov 4   ;;  %v1812_v38 = vlaneseq  ;;  %v4023_v48 = vld [vmem:[%s4113_s16] sm:$0x7f]  ;;  %vm2436_vm5 = vcmask 125952  }
 0x61e   : > { %s4141_s22 = scalar_lea.sflag [#allocation3], %s3764_s25  ;;  %s2976_s30 = smul.u32 896, %s3466_s0 }
 0x61f   : > { %2977 = dma.vmem_to_hbm [thread:$0]  (%p3483_p5), %s3985_s21, 128, %s3991_s27, %s4141_s22, %s3345_s19, %s3345_s19, %s3346_s24   ;;  %v4016_v45 = vshrl.u32 %v1812_v38, 7 }
 0x620   : > { %s2974_s21 = smul.u32 56, %s3764_s25  ;;  %s4142_s19 = sld [smem:[#allocation18_spill]] }
 0x621   : > { %v1814_v46 = vsub.s32 0, %v4016_v45  ;;  %v1822_v47 = vsub.s32 2, %v4016_v45  ;;  %v1818_v49 = vsub.s32 1, %v4016_v45  ;;  %v1826_v50 = vsub.s32 3, %v4016_v45  ;;  %s3347_s18 = smov [#allocation4]  }
 0x622   : > { %v1830_v32 = vsub.s32 4, %v4016_v45  ;;  %v1838_v33 = vsub.s32 6, %v4016_v45  ;;  %v1834_v39 = vsub.s32 5, %v4016_v45  ;;  %s4038_s27 = scalar_lea.vmem [#allocation4], %s2974_s21  ;;  %s3279_s23 = sshll.u32 %s3347_s18, 4  ;;  %s3280_s23 = int_to_ptr.vmem [resolvable:$false] %s3279_s23 }
 0x623   : > { %v1815_v51 = vrot.slane %v4023_v48, %v1814_v46  ;;  %v1823_v52 = vrot.slane %v4023_v48, %v1822_v47  ;;  %v1819_v53 = vrot.slane %v4023_v48, %v1818_v49  ;;  %v1827_v54 = vrot.slane %v4023_v48, %v1826_v50  ;;  %s2478_s29 = sshll.u32 %s4038_s27, 4  ;;  %s3281_s21 = scalar_lea.vmem %s3280_s23, 1792  ;;  %s4048_s29 = int_to_ptr.vmem [resolvable:$true] %s2478_s29 }
 0x624   : > { %v1831_v43 = vrot.slane %v4023_v48, %v1830_v32  ;;  %v1839_v44 = vrot.slane %v4023_v48, %v1838_v33  ;;  %v1835_v38 = vrot.slane %v4023_v48, %v1834_v39  ;;  %s3275_s22 = scalar_lea.vmem %s4048_s29, 896  ;;  %p3282_p2 = scmp.lt.s32.totalorder %s4048_s29, %s3280_s23 }
 0x625   : > { %p3276_p13 = scmp.ne.s32.totalorder %s4048_s29, %s3275_s22  ;;  %p3283_p3 = scmp.lt.s32.totalorder %s3281_s21, %s3275_s22 }
 0x626   : > { %s4053_s24 = scalar_lea.hbm %s4142_s19, %s2976_s30 }
 0x627   : > { %p3277_p0 = pnand %p3276_p13, %p3483_p5  ;;  %p3284_p4 = por %p3283_p3, %p3282_p2 }
 0x629   : > { %p3278_p1 = pneg %p3277_p0 }
 0x62b   : > { %p3285_p7 = pnand %p3284_p4, %p3278_p1 }
 0x6b1   : > { %v2169_v55 = vpop.f32.mrf.mxu1  ;;  %v2212_v56 = vpop.f32.mrf.mxu0 }
 0x6b2   : > { %v2170_v57 = vadd.f32 %v2169_v55, %v1815_v51  ;;  %v2213_v58 = vadd.f32 %v2212_v56, %v1823_v52 }
 0x6b3   : > { %v2171_v59 = vpop.f32.mrf.mxu1  ;;  %v2214_v60 = vpop.f32.mrf.mxu0 }
 0x6b4   : > { %v2305_v61 = vsub.f32 0.0, %v2170_v57  ;;  %v2307_v62 = vsub.f32 0.0, %v2213_v58  ;;  %v2172_v63 = vadd.f32 %v2171_v59, %v1819_v53  ;;  %v2215_v0 = vadd.f32 %v2214_v60, %v1827_v54 }
 0x6b5   : > { %v2173_v1 = vpop.f32.mrf.mxu1  ;;  %v2216_v2 = vpop.f32.mrf.mxu0 }
 0x6b6   : > { %v2319_v3 = vmul.f32 1.442695, %v2305_v61  ;;  %v2323_v4 = vmul.f32 1.442695, %v2307_v62  ;;  %v2306_v5 = vsub.f32 0.0, %v2172_v63  ;;  %v2308_v6 = vsub.f32 0.0, %v2215_v0 }
 0x6b7   : > { %v2174_v7 = vadd.f32 %v2173_v1, %v1815_v51  ;;  %v2217_v8 = vadd.f32 %v2216_v2, %v1823_v52  ;;  %v2175_v9 = vpop.f32.mrf.mxu1  ;;  %v2218_v10 = vpop.f32.mrf.mxu0 }
 0x6b8   : > { %3193 = vpow2.f32 %v2319_v3  ;;  %v2321_v11 = vmul.f32 1.442695, %v2306_v5  ;;  %v2325_v12 = vmul.f32 1.442695, %v2308_v6  ;;  %v2176_v13 = vadd.f32 %v2175_v9, %v1819_v53 }
 0x6b9   : > { %3195 = vpow2.f32 %v2323_v4  ;;  %v2312_v14 = vsub.f32 0.0, %v2174_v7  ;;  %v2314_v15 = vsub.f32 0.0, %v2217_v8  ;;  %v2219_v16 = vadd.f32 %v2218_v10, %v1827_v54 }
 0x6ba   : > { %3197 = vpow2.f32 %v2321_v11  ;;  %v2313_v17 = vsub.f32 0.0, %v2176_v13 }
 0x6bb   : > { %3199 = vpow2.f32 %v2325_v12  ;;  %v2333_v18 = vmul.f32 1.442695, %v2312_v14  ;;  %v2337_v19 = vmul.f32 1.442695, %v2314_v15  ;;  %v2315_v20 = vsub.f32 0.0, %v2219_v16 }
 0x6bc   : > { %v2335_v21 = vmul.f32 1.442695, %v2313_v17 }
 0x6bd   : > { %3201 = vpow2.f32 %v2333_v18  ;;  %v2339_v22 = vmul.f32 1.442695, %v2315_v20 }
 0x6be   : > { %3203 = vpow2.f32 %v2337_v19 }
 0x6bf   : > { %3205 = vpow2.f32 %v2335_v21 }
 0x6c0   : > { %3207 = vpow2.f32 %v2339_v22 }
 0x6c5   : > { %v3194_v23 = vpop.eup %3193 }
 0x6c6   : > { %v3196_v24 = vpop.eup %3195  ;;  %v2347_v25 = vadd.f32 1.0, %v3194_v23 }
 0x6c7   : > { %v3198_v26 = vpop.eup %3197  ;;  %v2349_v27 = vadd.f32 1.0, %v3196_v24 }
 0x6c8   : > { %v3200_v28 = vpop.eup %3199  ;;  %3209 = vrcp.f32 %v2347_v25  ;;  %v2348_v29 = vadd.f32 1.0, %v3198_v26 }
 0x6c9   : > { %3211 = vrcp.f32 %v2349_v27  ;;  %v2350_v30 = vadd.f32 1.0, %v3200_v28 }
 0x6ca   : > { %v3202_v31 = vpop.eup %3201  ;;  %3213 = vrcp.f32 %v2348_v29 }
 0x6cb   : > { %v3204_v34 = vpop.eup %3203  ;;  %3215 = vrcp.f32 %v2350_v30  ;;  %v2354_v35 = vadd.f32 1.0, %v3202_v31 }
 0x6cc   : > { %v3206_v36 = vpop.eup %3205  ;;  %v2356_v37 = vadd.f32 1.0, %v3204_v34 }
 0x6cd   : > { %v3208_v40 = vpop.eup %3207  ;;  %3217 = vrcp.f32 %v2354_v35  ;;  %v2355_v41 = vadd.f32 1.0, %v3206_v36 }
 0x6ce   : > { %3219 = vrcp.f32 %v2356_v37  ;;  %v2357_v42 = vadd.f32 1.0, %v3208_v40 }
 0x6cf   : > { %3221 = vrcp.f32 %v2355_v41 }
 0x6d0   : > { %3223 = vrcp.f32 %v2357_v42 }
 0x6d1   : > { %v2255_v46 = vpop.f32.mrf.mxu1  ;;  %v2298_v47 = vpop.f32.mrf.mxu0 }
 0x6d2   : > { %v2256_v49 = vadd.f32 %v2255_v46, %v1831_v43  ;;  %v2299_v50 = vadd.f32 %v2298_v47, %v1839_v44 }
 0x6d3   : > { %v2257_v51 = vpop.f32.mrf.mxu1  ;;  %v2972_v45 = vpop.f32.mrf.mxu0 }
 0x6d4   : > { %v2309_v52 = vsub.f32 0.0, %v2256_v49  ;;  %v2311_v53 = vsub.f32 0.0, %v2299_v50  ;;  %v2258_v54 = vadd.f32 %v2257_v51, %v1835_v38 }
 0x6d5   : > { %v3210_v55 = vpop.eup %3209  ;;  %v2259_v56 = vpop.f32.mrf.mxu1 }
 0x6d6   : > { %v2301_v57 = vpop.f32.mrf.mxu0  ;;  %v3212_v58 = vpop.eup %3211  ;;  %v2327_v59 = vmul.f32 1.442695, %v2309_v52  ;;  %v2331_v60 = vmul.f32 1.442695, %v2311_v53  ;;  %v2310_v61 = vsub.f32 0.0, %v2258_v54  ;;  %v2260_v62 = vadd.f32 %v2259_v56, %v1831_v43 }
 0x6d7   : > { %v3214_v63 = vpop.eup %3213  ;;  %v2302_v48 = vadd.f32 %v2301_v57, %v1839_v44  ;;  %v2261_v0 = vpop.f32.mrf.mxu1 }
 0x6d8   : > { %v2973_v1 = vpop.f32.mrf.mxu0  ;;  %v3216_v2 = vpop.eup %3215  ;;  %v2749_v3 = vpack.c.bf16 %v3214_v63, %v3210_v55  ;;  %3225 = vpow2.f32 %v2327_v59  ;;  %v2329_v4 = vmul.f32 1.442695, %v2310_v61  ;;  %v2316_v5 = vsub.f32 0.0, %v2260_v62 }
 0x6d9   : > { %v2750_v6 = vpack.c.bf16 %v3216_v2, %v3212_v58  ;;  %3227 = vpow2.f32 %v2331_v60  ;;  %v2318_v7 = vsub.f32 0.0, %v2302_v48  ;;  %v2262_v8 = vadd.f32 %v2261_v0, %v1835_v38 }
 0x6da   : > { %v3218_v9 = vpop.eup %3217  ;;  %2433 = vst [vmem:[%s4038_s27] sm:$0xff] %v2749_v3  ;;  %3229 = vpow2.f32 %v2329_v4  ;;  %v2341_v10 = vmul.f32 1.442695, %v2316_v5 }
 0x6db   : > { %v3220_v11 = vpop.eup %3219  ;;  %2434 = vst [vmem:[%s4038_s27 + $0x8] sm:$0xff] %v2750_v6  ;;  %v2345_v12 = vmul.f32 1.442695, %v2318_v7  ;;  %v2317_v13 = vsub.f32 0.0, %v2262_v8 }
 0x6dc   : > { %v3222_v14 = vpop.eup %3221  ;;  %3231 = vpow2.f32 %v2341_v10 }
 0x6dd   : > { %v3224_v15 = vpop.eup %3223  ;;  %v2753_v16 = vpack.c.bf16 %v3222_v14, %v3218_v9  ;;  %3233 = vpow2.f32 %v2345_v12  ;;  %v2343_v17 = vmul.f32 1.442695, %v2317_v13 }
 0x6de   : > { %v2754_v18 = vpack.c.bf16 %v3224_v15, %v3220_v11 }
 0x6df   : > { %2438 = vst [vmem:[%s4038_s27 + $0x1c] sm:$0xff] %v2753_v16  ;;  %3235 = vpow2.f32 %v2343_v17 }
 0x6e0   : > { %2439 = vst [vmem:[%s4038_s27 + $0x24] sm:$0xff] %v2754_v18 }
 0x6e5   : > { %v3226_v19 = vpop.eup %3225 }
 0x6e6   : > { %v3228_v20 = vpop.eup %3227  ;;  %v2351_v21 = vadd.f32 1.0, %v3226_v19 }
 0x6e7   : > { %v3230_v22 = vpop.eup %3229  ;;  %v2353_v23 = vadd.f32 1.0, %v3228_v20 }
 0x6e8   : > { %3237 = vrcp.f32 %v2351_v21  ;;  %v2352_v24 = vadd.f32 1.0, %v3230_v22 }
 0x6e9   : > { %v3232_v25 = vpop.eup %3231  ;;  %3239 = vrcp.f32 %v2353_v23 }
 0x6ea   : > { %v3234_v26 = vpop.eup %3233  ;;  %3241 = vrcp.f32 %v2352_v24  ;;  %v2358_v27 = vadd.f32 1.0, %v3232_v25 }
 0x6eb   : > { %v2360_v28 = vadd.f32 1.0, %v3234_v26 }
 0x6ec   : > { %v3236_v29 = vpop.eup %3235 }
 0x6ed   : > { %3243 = vrcp.f32 %v2360_v28  ;;  %v2359_v30 = vadd.f32 1.0, %v3236_v29 }
 0x6ee   : > { %3245 = vrcp.f32 %v2358_v27 }
 0x6ef   : > { %3247 = vrcp.f32 %v2359_v30 }
 0x6f5   : > { %v3238_v31 = vpop.eup %3237 }
 0x6f6   : > { %v3240_v32 = vpop.eup %3239 }
 0x6f7   : > { %v3242_v33 = vpop.eup %3241  ;;  %v2752_v34 = vpack.c.bf16 %v3240_v32, %v3240_v32 }
 0x6f8   : > { %v2751_v35 = vpack.c.bf16 %v3242_v33, %v3238_v31 }
 0x6f9   : > { %2437 = vst.msk [vmem:[%s4038_s27 + $0x18] sm:$0xf] %vm2436_vm5, %v2752_v34 }
 0x6fa   : > { %v3244_v36 = vpop.eup %3243  ;;  %2435 = vst [vmem:[%s4038_s27 + $0x10] sm:$0xff] %v2751_v35 }
 0x6fb   : > { %v3246_v37 = vpop.eup %3245  ;;  %v2756_v39 = vpack.c.bf16 %v3244_v36, %v3244_v36 }
 0x6fc   : > { %v3248_v40 = vpop.eup %3247 }
 0x6fd   : > { %2441 = vst.msk [vmem:[%s4038_s27 + $0x34] sm:$0xf] %vm2436_vm5, %v2756_v39  ;;  %v2755_v41 = vpack.c.bf16 %v3248_v40, %v3246_v37 }
 0x6ff   : > { %2440 = vst [vmem:[%s4038_s27 + $0x2c] sm:$0xff] %v2755_v41 }
 0x700   : > { %3288 = shalt.err (!%p3285_p7)
}
 0x701   : > { %s3289_s27 = scalar_lea.hbm %s4053_s24, 896  ;;  %s3293_s20 = scalar_lea.hbm %s4142_s19, 1792 }
 0x702   : > { %p3290_p8 = scmp.ne.s32.totalorder %s4053_s24, %s3289_s27  ;;  %p3294_p11 = scmp.lt.s32.totalorder %s4053_s24, %s4142_s19 }
 0x703   : > { %p3295_p12 = scmp.lt.s32.totalorder %s3293_s20, %s3289_s27 }
 0x704   : > { %p3291_p9 = pnand %p3290_p8, %p3483_p5 }
 0x705   : > { %p3296_p13 = por %p3295_p12, %p3294_p11 }
 0x706   : > { %p3292_p10 = pneg %p3291_p9 }
 0x708   : > { %p3297_p0 = pnand %p3296_p13, %p3292_p10 }
 0x70a   : > { %3300 = shalt.err (!%p3297_p0)
}
 0x70b   : > { %s3348_s22 = smov 448   ;;  %s3349_s23 = smov 28  }
 0x70c   : > { %s4143_s21 = scalar_lea.sflag [#allocation5], %s3764_s25 }
 0x70d   : > { %2978 = dma.vmem_to_hbm [thread:$0]  (%p3483_p5), %s4048_s29, 896, %s4053_s24, %s4143_s21, %s3348_s22, %s3348_s22, %s3349_s23  }
 0x70e PF: > { %s4144_s30 = sld [smem:[#allocation10_spill]] }
 0x70f   : > { %s4145_s1 = sld [smem:[#allocation8_spill]] }
 0x714   : > { %p2988_p1 = scmp.ge.s32.totalorder %s4144_s30, 2 }
 0x715   : > { %s2493_s0 = sand.u32 1, %s4145_s1  }
 0x716   : > { %p2982_p2 = pnand %p2988_p1, %p3487_p6  ;;  %s2494_s27 = scalar_lea.sflag [#allocation3], %s2493_s0 }
 0x718   : > { %p2983_p3 = pneg %p2982_p2 }
 0x71a   : > { %3318 = dma.done.wait (%p2983_p3), %s2494_s27, 128  }
 0x71b   : > { %3320 = vsyncadd (%p2983_p3), %s2494_s27, 4294967168  ;;  %s2503_s20 = scalar_lea.sflag [#allocation5], %s2493_s0 }
 0x71c   : > { %3322 = dma.done.wait (%p2983_p3), %s2503_s20, 896  }
 0x71d   : > { %3324 = vsyncadd (%p2983_p3), %s2503_s20, 4294966400  ;;  %s4147_s30 = sld [smem:[#allocation11_spill]]  ;;  %s4150_s27 = smov %s3331_s28 }
 0x71e   : > { %s4148_s2 = sld [smem:[#allocation9_spill]] }
 0x71f   : > { %s4149_s29 = sld [smem:[#allocation12_spill]] }
 0x723   : > { %p32_p5 = scmp.ge.s32.totalorder %s4147_s30, 4  }
 0x724   : > { %s4151_s28 = smov %s4148_s2 }
 0x725   :  { %34 = sbr.rel (!%p32_p5) target bundleno = 11 (0xb), region = 140 }
 0x72a   :  { %2508 = vsyncpa [#allocation3], 1 }
 0x72b   :  { %2510 = vsyncpa [#allocation3 + $0x1], 1 }
 0x72c   :  { %2511 = vsyncpa [#allocation5], 1 }
 0x72d   :  { %2513 = vsyncpa [#allocation5 + $0x1], 1 }

</bundles_post_ra>
